<compile_context>
chip_gen: v6e
topology: v6e:2x2x1
jax: 0.10.0
libtpu: 0.0.40
codegen_flags: <defaults>
</compile_context>

<pallas_src>
import functools

import jax
import jax.numpy as jnp
from jax.experimental import pallas as pl
from jax.experimental.pallas import tpu as pltpu

KSTRIDE = 128  # lane stride per flattened conv row (tile-aligned stores)


# ------------------------------ fused kernel ---------------------------------
def _fused_kernel(xsh_ref, wc_ref, wt_ref, b_ref, o_ref, flat_ref, *,
                  B, Cin, KH, KW, H, W, Ho, Wo, N):
    """Whole network in one invocation; everything resident in VMEM/SMEM.

    xsh_ref : (KW, Cin, H, B*W)  VMEM  batch lane-packed, kw pre-shifted input
    wc_ref  : (Cin*KH*KW,)       SMEM  conv weight flattened in (I, kh, kw) order
    wt_ref  : (B*N, Ho*128)      VMEM  lane-dense linear weight (see wrapper)
    b_ref   : (1, B*N)           VMEM  linear bias, tiled per image
    o_ref   : (1, B*N)           VMEM  sigmoid output (reshaped to (B, N) outside)
    flat_ref: (1, Ho*128)        VMEM  scratch: flattened activation, 128-stride rows
    """
    LW = B * W

    # Hoist the 27 conv-weight scalar loads out of the FMA loops.
    wcs = [wc_ref[i] for i in range(Cin * KH * KW)]

    # ---- conv3x3 (valid, stride 1, Cout=1), both images in the same vregs ----
    # kw shifts were pre-applied in the wrapper; kh is a cheap sublane slice.
    # Independent accumulators (one per kh) break the serial accumulation chain.
    accs = [None] * KH
    for kw in range(KW):
        for ci in range(Cin):
            xc = xsh_ref[kw, ci]                              # (H, LW) plain load
            for kh in range(KH):
                t = xc[kh:kh + Ho, :] * wcs[(ci * KH + kh) * KW + kw]
                accs[kh] = t if accs[kh] is None else accs[kh] + t
    acc = (accs[0] + accs[1]) + accs[2]                       # (Ho, LW)

    # ---- LeakyReLU(0.01) -----------------------------------------------------
    act = jnp.where(acc > 0.0, acc, 0.01 * acc)

    # ---- flatten: conv row h -> lanes [h*128, h*128 + LW) of the scratch ------
    # 128-aligned start + data already at lane offset 0 => no lane rotation.
    flat_ref[...] = jnp.zeros((1, Ho * KSTRIDE), jnp.float32)
    for h in range(Ho):
        flat_ref[:, h * KSTRIDE:h * KSTRIDE + LW] = act[h:h + 1, :]

    # ---- ONE MXU contraction over the padded-flattened axis -------------------
    #   out[0, b*N + n] = sum_k flat[0, k] * wt[b*N + n, k]
    z = jax.lax.dot_general(flat_ref[...], wt_ref[...],
                            dimension_numbers=(((1,), (1,)), ((), ())),
                            preferred_element_type=jnp.float32)   # (1, B*N)
    z = z + b_ref[...]
    o_ref[...] = 1.0 / (1.0 + jnp.exp(-z))                    # exact sigmoid


# --------------------------------- forward -----------------------------------
def cnn2_c41_forward(x, params):
    """Mirrors cnn2_c41.forward: returns (final activation, list of per-layer shapes)."""
    wc, wl, bl = params
    B, Cin, H, W = x.shape
    Cout, _, KH, KW = wc.shape
    assert Cout == 1
    Ho, Wo = H - KH + 1, W - KW + 1
    N, K = wl.shape
    assert K == Cout * Ho * Wo
    LW = B * W

    # Pack batch along lanes: xp[ci, h, b*W + w] = x[b, ci, h, w].
    xp = jnp.transpose(x, (1, 2, 0, 3)).reshape(Cin, H, LW)
    # Pre-shift the kw offsets (zero-fill on the right).  Shifted-in columns only
    # reach discarded (w >= Wo) conv outputs / zero-weight lanes.
    xsh = jnp.stack(
        [jnp.pad(xp[:, :, kw:], ((0, 0), (0, 0), (0, kw))) for kw in range(KW)],
        axis=0)                                               # (KW, Cin, H, LW)

    # Linear weight, lane-dense, matching the packed flattened activation layout:
    #   wt[b*N + n, h*128 + b*W + w] = wl[n, h*Wo + w]   (w < Wo, zeros elsewhere)
    wl3 = wl.reshape(N, Ho, Wo)
    w4 = jnp.zeros((B, N, Ho, KSTRIDE), wl.dtype)
    for b in range(B):
        w4 = w4.at[b, :, :, b * W:b * W + Wo].set(wl3)
    wt = w4.reshape(B * N, Ho * KSTRIDE)
    bias = jnp.tile(bl, B).reshape(1, B * N)

    kernel = functools.partial(_fused_kernel, B=B, Cin=Cin, KH=KH, KW=KW,
                               H=H, W=W, Ho=Ho, Wo=Wo, N=N)
    out_flat = pl.pallas_call(
        kernel,
        out_shape=jax.ShapeDtypeStruct((1, B * N), jnp.float32),
        grid=(1,),
        in_specs=[
            pl.BlockSpec((KW, Cin, H, LW), lambda i: (0, 0, 0, 0)),
            pl.BlockSpec(memory_space=pltpu.SMEM),
            pl.BlockSpec((B * N, Ho * KSTRIDE), lambda i: (0, 0)),
            pl.BlockSpec((1, B * N), lambda i: (0, 0)),
        ],
        out_specs=pl.BlockSpec((1, B * N), lambda i: (0, 0)),
        scratch_shapes=[pltpu.VMEM((1, Ho * KSTRIDE), jnp.float32)],
        compiler_params=pltpu.CompilerParams(dimension_semantics=("arbitrary",)),
    )(xsh, wc.reshape(-1), wt, bias)

    out = out_flat.reshape(B, N)
    x_shape = [(B, Cout, Ho, Wo), (B, N)]   # shapes after each (layer, activation)
    return out, x_shape


# --------------------------- pure-JAX reference ------------------------------
def _ref_forward(x, params):
    wc, wl, bl = params
    y = jax.lax.conv_general_dilated(
        x, wc, (1, 1), "VALID", dimension_numbers=("NCHW", "OIHW", "NCHW"))
    y = jnp.where(y > 0.0, y, 0.01 * y)           # LeakyReLU(0.01)
    y = y.reshape(y.shape[0], -1)                 # torch.flatten(x, 1)
    return jax.nn.sigmoid(y @ wl.T + bl)


if __name__ == "__main__":
    key = jax.random.PRNGKey(0)
    k_x, k_wc, k_wl, k_bl = jax.random.split(key, 4)

    B, Cin, H, W = 2, 3, 32, 32       # Linear(900) pins spatial size: (32-2)^2 = 900
    x = jax.random.normal(k_x, (B, Cin, H, W), dtype=jnp.float32)

    # Deterministic parameter init (shapes from the module's __init__; fan-in scaling).
    wc = jax.random.normal(k_wc, (1, 3, 3, 3), dtype=jnp.float32) * (1.0 / (3 * 9) ** 0.5)
    wl = jax.random.normal(k_wl, (10, 900), dtype=jnp.float32) * (1.0 / 900 ** 0.5)
    bl = jax.random.normal(k_bl, (10,), dtype=jnp.float32) * 0.01
    params = (wc, wl, bl)

    out, shapes = cnn2_c41_forward(x, params)
    out = jax.block_until_ready(out)

    assert out.shape == (B, 10)
    assert shapes == [(B, 1, 30, 30), (B, 10)]

    ref = jax.block_until_ready(_ref_forward(x, params))
    assert bool(jnp.all(jnp.isfinite(out)))
    assert bool(jnp.allclose(out, ref, atol=5e-5, rtol=5e-5))

    print("KERNEL_OK")
</pallas_src>

<mosaic_0001>
module attributes {stable_mosaic.version = 11 : i64} {
  func.func @_fused_kernel(%arg0: i32, %arg1: memref<3x3x32x64xf32, #tpu.memory_space<vmem>>, %arg2: memref<27xf32, #tpu.memory_space<smem>>, %arg3: memref<20x3840xf32, #tpu.memory_space<vmem>>, %arg4: memref<1x20xf32, #tpu.memory_space<vmem>>, %arg5: memref<1x20xf32, #tpu.memory_space<vmem>>, %arg6: memref<1x3840xf32, #tpu.memory_space<vmem>>) attributes {dimension_semantics = [#tpu.dimension_semantics<arbitrary>], iteration_bounds = array<i64: 1>, scalar_prefetch = 0 : i64, scratch_operands = 1 : i64, tpu.core_type = #tpu.core_type<tc>, window_params = [{pipeline_mode = #tpu.pipeline_mode<synchronous>, transform_indices = @transform_0, window_bounds = array<i64: 3, 3, 32, 64>}, {transform_indices = @transform_1, window_bounds = array<i64: 27>}, {pipeline_mode = #tpu.pipeline_mode<synchronous>, transform_indices = @transform_2, window_bounds = array<i64: 20, 3840>}, {pipeline_mode = #tpu.pipeline_mode<synchronous>, transform_indices = @transform_3, window_bounds = array<i64: 1, 20>}, {pipeline_mode = #tpu.pipeline_mode<synchronous>, transform_indices = @transform_4, window_bounds = array<i64: 1, 20>}]} {
    %c0 = arith.constant 0 : index
    %0 = memref.load %arg2[%c0] : memref<27xf32, #tpu.memory_space<smem>>
    %c1 = arith.constant 1 : index
    %1 = memref.load %arg2[%c1] : memref<27xf32, #tpu.memory_space<smem>>
    %c2 = arith.constant 2 : index
    %2 = memref.load %arg2[%c2] : memref<27xf32, #tpu.memory_space<smem>>
    %c3 = arith.constant 3 : index
    %3 = memref.load %arg2[%c3] : memref<27xf32, #tpu.memory_space<smem>>
    %c4 = arith.constant 4 : index
    %4 = memref.load %arg2[%c4] : memref<27xf32, #tpu.memory_space<smem>>
    %c5 = arith.constant 5 : index
    %5 = memref.load %arg2[%c5] : memref<27xf32, #tpu.memory_space<smem>>
    %c6 = arith.constant 6 : index
    %6 = memref.load %arg2[%c6] : memref<27xf32, #tpu.memory_space<smem>>
    %c7 = arith.constant 7 : index
    %7 = memref.load %arg2[%c7] : memref<27xf32, #tpu.memory_space<smem>>
    %c8 = arith.constant 8 : index
    %8 = memref.load %arg2[%c8] : memref<27xf32, #tpu.memory_space<smem>>
    %c9 = arith.constant 9 : index
    %9 = memref.load %arg2[%c9] : memref<27xf32, #tpu.memory_space<smem>>
    %c10 = arith.constant 10 : index
    %10 = memref.load %arg2[%c10] : memref<27xf32, #tpu.memory_space<smem>>
    %c11 = arith.constant 11 : index
    %11 = memref.load %arg2[%c11] : memref<27xf32, #tpu.memory_space<smem>>
    %c12 = arith.constant 12 : index
    %12 = memref.load %arg2[%c12] : memref<27xf32, #tpu.memory_space<smem>>
    %c13 = arith.constant 13 : index
    %13 = memref.load %arg2[%c13] : memref<27xf32, #tpu.memory_space<smem>>
    %c14 = arith.constant 14 : index
    %14 = memref.load %arg2[%c14] : memref<27xf32, #tpu.memory_space<smem>>
    %c15 = arith.constant 15 : index
    %15 = memref.load %arg2[%c15] : memref<27xf32, #tpu.memory_space<smem>>
    %c16 = arith.constant 16 : index
    %16 = memref.load %arg2[%c16] : memref<27xf32, #tpu.memory_space<smem>>
    %c17 = arith.constant 17 : index
    %17 = memref.load %arg2[%c17] : memref<27xf32, #tpu.memory_space<smem>>
    %c18 = arith.constant 18 : index
    %18 = memref.load %arg2[%c18] : memref<27xf32, #tpu.memory_space<smem>>
    %c19 = arith.constant 19 : index
    %19 = memref.load %arg2[%c19] : memref<27xf32, #tpu.memory_space<smem>>
    %c20 = arith.constant 20 : index
    %20 = memref.load %arg2[%c20] : memref<27xf32, #tpu.memory_space<smem>>
    %c21 = arith.constant 21 : index
    %21 = memref.load %arg2[%c21] : memref<27xf32, #tpu.memory_space<smem>>
    %c22 = arith.constant 22 : index
    %22 = memref.load %arg2[%c22] : memref<27xf32, #tpu.memory_space<smem>>
    %c23 = arith.constant 23 : index
    %23 = memref.load %arg2[%c23] : memref<27xf32, #tpu.memory_space<smem>>
    %c24 = arith.constant 24 : index
    %24 = memref.load %arg2[%c24] : memref<27xf32, #tpu.memory_space<smem>>
    %c25 = arith.constant 25 : index
    %25 = memref.load %arg2[%c25] : memref<27xf32, #tpu.memory_space<smem>>
    %c26 = arith.constant 26 : index
    %26 = memref.load %arg2[%c26] : memref<27xf32, #tpu.memory_space<smem>>
    %c0_0 = arith.constant 0 : index
    %c0_1 = arith.constant 0 : index
    %c0_2 = arith.constant 0 : index
    %c0_3 = arith.constant 0 : index
    %27 = vector.load %arg1[%c0_0, %c0_1, %c0_2, %c0_3] : memref<3x3x32x64xf32, #tpu.memory_space<vmem>>, vector<1x1x32x64xf32>
    %28 = vector.shape_cast %27 : vector<1x1x32x64xf32> to vector<32x64xf32>
    %29 = vector.extract_strided_slice %28 {offsets = [0, 0], sizes = [30, 64], strides = [1, 1]} : vector<32x64xf32> to vector<30x64xf32>
    %30 = vector.broadcast %0 : f32 to vector<30x64xf32>
    %31 = arith.mulf %29, %30 : vector<30x64xf32>
    %32 = vector.extract_strided_slice %28 {offsets = [1, 0], sizes = [30, 64], strides = [1, 1]} : vector<32x64xf32> to vector<30x64xf32>
    %33 = vector.broadcast %3 : f32 to vector<30x64xf32>
    %34 = arith.mulf %32, %33 : vector<30x64xf32>
    %35 = vector.extract_strided_slice %28 {offsets = [2, 0], sizes = [30, 64], strides = [1, 1]} : vector<32x64xf32> to vector<30x64xf32>
    %36 = vector.broadcast %6 : f32 to vector<30x64xf32>
    %37 = arith.mulf %35, %36 : vector<30x64xf32>
    %c0_4 = arith.constant 0 : index
    %c1_5 = arith.constant 1 : index
    %c0_6 = arith.constant 0 : index
    %c0_7 = arith.constant 0 : index
    %38 = vector.load %arg1[%c0_4, %c1_5, %c0_6, %c0_7] : memref<3x3x32x64xf32, #tpu.memory_space<vmem>>, vector<1x1x32x64xf32>
    %39 = vector.shape_cast %38 : vector<1x1x32x64xf32> to vector<32x64xf32>
    %40 = vector.extract_strided_slice %39 {offsets = [0, 0], sizes = [30, 64], strides = [1, 1]} : vector<32x64xf32> to vector<30x64xf32>
    %41 = vector.broadcast %9 : f32 to vector<30x64xf32>
    %42 = arith.mulf %40, %41 : vector<30x64xf32>
    %43 = arith.addf %31, %42 : vector<30x64xf32>
    %44 = vector.extract_strided_slice %39 {offsets = [1, 0], sizes = [30, 64], strides = [1, 1]} : vector<32x64xf32> to vector<30x64xf32>
    %45 = vector.broadcast %12 : f32 to vector<30x64xf32>
    %46 = arith.mulf %44, %45 : vector<30x64xf32>
    %47 = arith.addf %34, %46 : vector<30x64xf32>
    %48 = vector.extract_strided_slice %39 {offsets = [2, 0], sizes = [30, 64], strides = [1, 1]} : vector<32x64xf32> to vector<30x64xf32>
    %49 = vector.broadcast %15 : f32 to vector<30x64xf32>
    %50 = arith.mulf %48, %49 : vector<30x64xf32>
    %51 = arith.addf %37, %50 : vector<30x64xf32>
    %c0_8 = arith.constant 0 : index
    %c2_9 = arith.constant 2 : index
    %c0_10 = arith.constant 0 : index
    %c0_11 = arith.constant 0 : index
    %52 = vector.load %arg1[%c0_8, %c2_9, %c0_10, %c0_11] : memref<3x3x32x64xf32, #tpu.memory_space<vmem>>, vector<1x1x32x64xf32>
    %53 = vector.shape_cast %52 : vector<1x1x32x64xf32> to vector<32x64xf32>
    %54 = vector.extract_strided_slice %53 {offsets = [0, 0], sizes = [30, 64], strides = [1, 1]} : vector<32x64xf32> to vector<30x64xf32>
    %55 = vector.broadcast %18 : f32 to vector<30x64xf32>
    %56 = arith.mulf %54, %55 : vector<30x64xf32>
    %57 = arith.addf %43, %56 : vector<30x64xf32>
    %58 = vector.extract_strided_slice %53 {offsets = [1, 0], sizes = [30, 64], strides = [1, 1]} : vector<32x64xf32> to vector<30x64xf32>
    %59 = vector.broadcast %21 : f32 to vector<30x64xf32>
    %60 = arith.mulf %58, %59 : vector<30x64xf32>
    %61 = arith.addf %47, %60 : vector<30x64xf32>
    %62 = vector.extract_strided_slice %53 {offsets = [2, 0], sizes = [30, 64], strides = [1, 1]} : vector<32x64xf32> to vector<30x64xf32>
    %63 = vector.broadcast %24 : f32 to vector<30x64xf32>
    %64 = arith.mulf %62, %63 : vector<30x64xf32>
    %65 = arith.addf %51, %64 : vector<30x64xf32>
    %c1_12 = arith.constant 1 : index
    %c0_13 = arith.constant 0 : index
    %c0_14 = arith.constant 0 : index
    %c0_15 = arith.constant 0 : index
    %66 = vector.load %arg1[%c1_12, %c0_13, %c0_14, %c0_15] : memref<3x3x32x64xf32, #tpu.memory_space<vmem>>, vector<1x1x32x64xf32>
    %67 = vector.shape_cast %66 : vector<1x1x32x64xf32> to vector<32x64xf32>
    %68 = vector.extract_strided_slice %67 {offsets = [0, 0], sizes = [30, 64], strides = [1, 1]} : vector<32x64xf32> to vector<30x64xf32>
    %69 = vector.broadcast %1 : f32 to vector<30x64xf32>
    %70 = arith.mulf %68, %69 : vector<30x64xf32>
    %71 = arith.addf %57, %70 : vector<30x64xf32>
    %72 = vector.extract_strided_slice %67 {offsets = [1, 0], sizes = [30, 64], strides = [1, 1]} : vector<32x64xf32> to vector<30x64xf32>
    %73 = vector.broadcast %4 : f32 to vector<30x64xf32>
    %74 = arith.mulf %72, %73 : vector<30x64xf32>
    %75 = arith.addf %61, %74 : vector<30x64xf32>
    %76 = vector.extract_strided_slice %67 {offsets = [2, 0], sizes = [30, 64], strides = [1, 1]} : vector<32x64xf32> to vector<30x64xf32>
    %77 = vector.broadcast %7 : f32 to vector<30x64xf32>
    %78 = arith.mulf %76, %77 : vector<30x64xf32>
    %79 = arith.addf %65, %78 : vector<30x64xf32>
    %c1_16 = arith.constant 1 : index
    %c1_17 = arith.constant 1 : index
    %c0_18 = arith.constant 0 : index
    %c0_19 = arith.constant 0 : index
    %80 = vector.load %arg1[%c1_16, %c1_17, %c0_18, %c0_19] : memref<3x3x32x64xf32, #tpu.memory_space<vmem>>, vector<1x1x32x64xf32>
    %81 = vector.shape_cast %80 : vector<1x1x32x64xf32> to vector<32x64xf32>
    %82 = vector.extract_strided_slice %81 {offsets = [0, 0], sizes = [30, 64], strides = [1, 1]} : vector<32x64xf32> to vector<30x64xf32>
    %83 = vector.broadcast %10 : f32 to vector<30x64xf32>
    %84 = arith.mulf %82, %83 : vector<30x64xf32>
    %85 = arith.addf %71, %84 : vector<30x64xf32>
    %86 = vector.extract_strided_slice %81 {offsets = [1, 0], sizes = [30, 64], strides = [1, 1]} : vector<32x64xf32> to vector<30x64xf32>
    %87 = vector.broadcast %13 : f32 to vector<30x64xf32>
    %88 = arith.mulf %86, %87 : vector<30x64xf32>
    %89 = arith.addf %75, %88 : vector<30x64xf32>
    %90 = vector.extract_strided_slice %81 {offsets = [2, 0], sizes = [30, 64], strides = [1, 1]} : vector<32x64xf32> to vector<30x64xf32>
    %91 = vector.broadcast %16 : f32 to vector<30x64xf32>
    %92 = arith.mulf %90, %91 : vector<30x64xf32>
    %93 = arith.addf %79, %92 : vector<30x64xf32>
    %c1_20 = arith.constant 1 : index
    %c2_21 = arith.constant 2 : index
    %c0_22 = arith.constant 0 : index
    %c0_23 = arith.constant 0 : index
    %94 = vector.load %arg1[%c1_20, %c2_21, %c0_22, %c0_23] : memref<3x3x32x64xf32, #tpu.memory_space<vmem>>, vector<1x1x32x64xf32>
    %95 = vector.shape_cast %94 : vector<1x1x32x64xf32> to vector<32x64xf32>
    %96 = vector.extract_strided_slice %95 {offsets = [0, 0], sizes = [30, 64], strides = [1, 1]} : vector<32x64xf32> to vector<30x64xf32>
    %97 = vector.broadcast %19 : f32 to vector<30x64xf32>
    %98 = arith.mulf %96, %97 : vector<30x64xf32>
    %99 = arith.addf %85, %98 : vector<30x64xf32>
    %100 = vector.extract_strided_slice %95 {offsets = [1, 0], sizes = [30, 64], strides = [1, 1]} : vector<32x64xf32> to vector<30x64xf32>
    %101 = vector.broadcast %22 : f32 to vector<30x64xf32>
    %102 = arith.mulf %100, %101 : vector<30x64xf32>
    %103 = arith.addf %89, %102 : vector<30x64xf32>
    %104 = vector.extract_strided_slice %95 {offsets = [2, 0], sizes = [30, 64], strides = [1, 1]} : vector<32x64xf32> to vector<30x64xf32>
    %105 = vector.broadcast %25 : f32 to vector<30x64xf32>
    %106 = arith.mulf %104, %105 : vector<30x64xf32>
    %107 = arith.addf %93, %106 : vector<30x64xf32>
    %c2_24 = arith.constant 2 : index
    %c0_25 = arith.constant 0 : index
    %c0_26 = arith.constant 0 : index
    %c0_27 = arith.constant 0 : index
    %108 = vector.load %arg1[%c2_24, %c0_25, %c0_26, %c0_27] : memref<3x3x32x64xf32, #tpu.memory_space<vmem>>, vector<1x1x32x64xf32>
    %109 = vector.shape_cast %108 : vector<1x1x32x64xf32> to vector<32x64xf32>
    %110 = vector.extract_strided_slice %109 {offsets = [0, 0], sizes = [30, 64], strides = [1, 1]} : vector<32x64xf32> to vector<30x64xf32>
    %111 = vector.broadcast %2 : f32 to vector<30x64xf32>
    %112 = arith.mulf %110, %111 : vector<30x64xf32>
    %113 = arith.addf %99, %112 : vector<30x64xf32>
    %114 = vector.extract_strided_slice %109 {offsets = [1, 0], sizes = [30, 64], strides = [1, 1]} : vector<32x64xf32> to vector<30x64xf32>
    %115 = vector.broadcast %5 : f32 to vector<30x64xf32>
    %116 = arith.mulf %114, %115 : vector<30x64xf32>
    %117 = arith.addf %103, %116 : vector<30x64xf32>
    %118 = vector.extract_strided_slice %109 {offsets = [2, 0], sizes = [30, 64], strides = [1, 1]} : vector<32x64xf32> to vector<30x64xf32>
    %119 = vector.broadcast %8 : f32 to vector<30x64xf32>
    %120 = arith.mulf %118, %119 : vector<30x64xf32>
    %121 = arith.addf %107, %120 : vector<30x64xf32>
    %c2_28 = arith.constant 2 : index
    %c1_29 = arith.constant 1 : index
    %c0_30 = arith.constant 0 : index
    %c0_31 = arith.constant 0 : index
    %122 = vector.load %arg1[%c2_28, %c1_29, %c0_30, %c0_31] : memref<3x3x32x64xf32, #tpu.memory_space<vmem>>, vector<1x1x32x64xf32>
    %123 = vector.shape_cast %122 : vector<1x1x32x64xf32> to vector<32x64xf32>
    %124 = vector.extract_strided_slice %123 {offsets = [0, 0], sizes = [30, 64], strides = [1, 1]} : vector<32x64xf32> to vector<30x64xf32>
    %125 = vector.broadcast %11 : f32 to vector<30x64xf32>
    %126 = arith.mulf %124, %125 : vector<30x64xf32>
    %127 = arith.addf %113, %126 : vector<30x64xf32>
    %128 = vector.extract_strided_slice %123 {offsets = [1, 0], sizes = [30, 64], strides = [1, 1]} : vector<32x64xf32> to vector<30x64xf32>
    %129 = vector.broadcast %14 : f32 to vector<30x64xf32>
    %130 = arith.mulf %128, %129 : vector<30x64xf32>
    %131 = arith.addf %117, %130 : vector<30x64xf32>
    %132 = vector.extract_strided_slice %123 {offsets = [2, 0], sizes = [30, 64], strides = [1, 1]} : vector<32x64xf32> to vector<30x64xf32>
    %133 = vector.broadcast %17 : f32 to vector<30x64xf32>
    %134 = arith.mulf %132, %133 : vector<30x64xf32>
    %135 = arith.addf %121, %134 : vector<30x64xf32>
    %c2_32 = arith.constant 2 : index
    %c2_33 = arith.constant 2 : index
    %c0_34 = arith.constant 0 : index
    %c0_35 = arith.constant 0 : index
    %136 = vector.load %arg1[%c2_32, %c2_33, %c0_34, %c0_35] : memref<3x3x32x64xf32, #tpu.memory_space<vmem>>, vector<1x1x32x64xf32>
    %137 = vector.shape_cast %136 : vector<1x1x32x64xf32> to vector<32x64xf32>
    %138 = vector.extract_strided_slice %137 {offsets = [0, 0], sizes = [30, 64], strides = [1, 1]} : vector<32x64xf32> to vector<30x64xf32>
    %139 = vector.broadcast %20 : f32 to vector<30x64xf32>
    %140 = arith.mulf %138, %139 : vector<30x64xf32>
    %141 = arith.addf %127, %140 : vector<30x64xf32>
    %142 = vector.extract_strided_slice %137 {offsets = [1, 0], sizes = [30, 64], strides = [1, 1]} : vector<32x64xf32> to vector<30x64xf32>
    %143 = vector.broadcast %23 : f32 to vector<30x64xf32>
    %144 = arith.mulf %142, %143 : vector<30x64xf32>
    %145 = arith.addf %131, %144 : vector<30x64xf32>
    %146 = vector.extract_strided_slice %137 {offsets = [2, 0], sizes = [30, 64], strides = [1, 1]} : vector<32x64xf32> to vector<30x64xf32>
    %147 = vector.broadcast %26 : f32 to vector<30x64xf32>
    %148 = arith.mulf %146, %147 : vector<30x64xf32>
    %149 = arith.addf %135, %148 : vector<30x64xf32>
    %150 = arith.addf %141, %145 : vector<30x64xf32>
    %151 = arith.addf %150, %149 : vector<30x64xf32>
    %cst = arith.constant 0.000000e+00 : f32
    %152 = vector.broadcast %cst : f32 to vector<30x64xf32>
    %153 = arith.cmpf ogt, %151, %152 : vector<30x64xf32>
    %cst_36 = arith.constant 0.00999999977 : f32
    %154 = vector.broadcast %cst_36 : f32 to vector<30x64xf32>
    %155 = arith.mulf %154, %151 : vector<30x64xf32>
    %156 = arith.select %153, %151, %155 : vector<30x64xi1>, vector<30x64xf32>
    %cst_37 = arith.constant 0.000000e+00 : f32
    %157 = vector.broadcast %cst_37 : f32 to vector<1x3840xf32>
    %c0_38 = arith.constant 0 : index
    %c0_39 = arith.constant 0 : index
    %158 = vector.load %arg6[%c0_38, %c0_39] : memref<1x3840xf32, #tpu.memory_space<vmem>>, vector<1x3840xf32>
    tpu.vector_store %arg6[%c0_38, %c0_39], %157 {strides = array<i32>} : memref<1x3840xf32, #tpu.memory_space<vmem>>, vector<1x3840xf32>,
    %159 = vector.extract_strided_slice %156 {offsets = [0, 0], sizes = [1, 64], strides = [1, 1]} : vector<30x64xf32> to vector<1x64xf32>
    %c0_40 = arith.constant 0 : index
    %c0_41 = arith.constant 0 : index
    %160 = vector.load %arg6[%c0_40, %c0_41] : memref<1x3840xf32, #tpu.memory_space<vmem>>, vector<1x64xf32>
    tpu.vector_store %arg6[%c0_40, %c0_41], %159 {strides = array<i32>} : memref<1x3840xf32, #tpu.memory_space<vmem>>, vector<1x64xf32>,
    %161 = vector.extract_strided_slice %156 {offsets = [1, 0], sizes = [1, 64], strides = [1, 1]} : vector<30x64xf32> to vector<1x64xf32>
    %c0_42 = arith.constant 0 : index
    %c128 = arith.constant 128 : index
    %162 = vector.load %arg6[%c0_42, %c128] : memref<1x3840xf32, #tpu.memory_space<vmem>>, vector<1x64xf32>
    tpu.vector_store %arg6[%c0_42, %c128], %161 {strides = array<i32>} : memref<1x3840xf32, #tpu.memory_space<vmem>>, vector<1x64xf32>,
    %163 = vector.extract_strided_slice %156 {offsets = [2, 0], sizes = [1, 64], strides = [1, 1]} : vector<30x64xf32> to vector<1x64xf32>
    %c0_43 = arith.constant 0 : index
    %c256 = arith.constant 256 : index
    %164 = vector.load %arg6[%c0_43, %c256] : memref<1x3840xf32, #tpu.memory_space<vmem>>, vector<1x64xf32>
    tpu.vector_store %arg6[%c0_43, %c256], %163 {strides = array<i32>} : memref<1x3840xf32, #tpu.memory_space<vmem>>, vector<1x64xf32>,
    %165 = vector.extract_strided_slice %156 {offsets = [3, 0], sizes = [1, 64], strides = [1, 1]} : vector<30x64xf32> to vector<1x64xf32>
    %c0_44 = arith.constant 0 : index
    %c384 = arith.constant 384 : index
    %166 = vector.load %arg6[%c0_44, %c384] : memref<1x3840xf32, #tpu.memory_space<vmem>>, vector<1x64xf32>
    tpu.vector_store %arg6[%c0_44, %c384], %165 {strides = array<i32>} : memref<1x3840xf32, #tpu.memory_space<vmem>>, vector<1x64xf32>,
    %167 = vector.extract_strided_slice %156 {offsets = [4, 0], sizes = [1, 64], strides = [1, 1]} : vector<30x64xf32> to vector<1x64xf32>
    %c0_45 = arith.constant 0 : index
    %c512 = arith.constant 512 : index
    %168 = vector.load %arg6[%c0_45, %c512] : memref<1x3840xf32, #tpu.memory_space<vmem>>, vector<1x64xf32>
    tpu.vector_store %arg6[%c0_45, %c512], %167 {strides = array<i32>} : memref<1x3840xf32, #tpu.memory_space<vmem>>, vector<1x64xf32>,
    %169 = vector.extract_strided_slice %156 {offsets = [5, 0], sizes = [1, 64], strides = [1, 1]} : vector<30x64xf32> to vector<1x64xf32>
    %c0_46 = arith.constant 0 : index
    %c640 = arith.constant 640 : index
    %170 = vector.load %arg6[%c0_46, %c640] : memref<1x3840xf32, #tpu.memory_space<vmem>>, vector<1x64xf32>
    tpu.vector_store %arg6[%c0_46, %c640], %169 {strides = array<i32>} : memref<1x3840xf32, #tpu.memory_space<vmem>>, vector<1x64xf32>,
    %171 = vector.extract_strided_slice %156 {offsets = [6, 0], sizes = [1, 64], strides = [1, 1]} : vector<30x64xf32> to vector<1x64xf32>
    %c0_47 = arith.constant 0 : index
    %c768 = arith.constant 768 : index
    %172 = vector.load %arg6[%c0_47, %c768] : memref<1x3840xf32, #tpu.memory_space<vmem>>, vector<1x64xf32>
    tpu.vector_store %arg6[%c0_47, %c768], %171 {strides = array<i32>} : memref<1x3840xf32, #tpu.memory_space<vmem>>, vector<1x64xf32>,
    %173 = vector.extract_strided_slice %156 {offsets = [7, 0], sizes = [1, 64], strides = [1, 1]} : vector<30x64xf32> to vector<1x64xf32>
    %c0_48 = arith.constant 0 : index
    %c896 = arith.constant 896 : index
    %174 = vector.load %arg6[%c0_48, %c896] : memref<1x3840xf32, #tpu.memory_space<vmem>>, vector<1x64xf32>
    tpu.vector_store %arg6[%c0_48, %c896], %173 {strides = array<i32>} : memref<1x3840xf32, #tpu.memory_space<vmem>>, vector<1x64xf32>,
    %175 = vector.extract_strided_slice %156 {offsets = [8, 0], sizes = [1, 64], strides = [1, 1]} : vector<30x64xf32> to vector<1x64xf32>
    %c0_49 = arith.constant 0 : index
    %c1024 = arith.constant 1024 : index
    %176 = vector.load %arg6[%c0_49, %c1024] : memref<1x3840xf32, #tpu.memory_space<vmem>>, vector<1x64xf32>
    tpu.vector_store %arg6[%c0_49, %c1024], %175 {strides = array<i32>} : memref<1x3840xf32, #tpu.memory_space<vmem>>, vector<1x64xf32>,
    %177 = vector.extract_strided_slice %156 {offsets = [9, 0], sizes = [1, 64], strides = [1, 1]} : vector<30x64xf32> to vector<1x64xf32>
    %c0_50 = arith.constant 0 : index
    %c1152 = arith.constant 1152 : index
    %178 = vector.load %arg6[%c0_50, %c1152] : memref<1x3840xf32, #tpu.memory_space<vmem>>, vector<1x64xf32>
    tpu.vector_store %arg6[%c0_50, %c1152], %177 {strides = array<i32>} : memref<1x3840xf32, #tpu.memory_space<vmem>>, vector<1x64xf32>,
    %179 = vector.extract_strided_slice %156 {offsets = [10, 0], sizes = [1, 64], strides = [1, 1]} : vector<30x64xf32> to vector<1x64xf32>
    %c0_51 = arith.constant 0 : index
    %c1280 = arith.constant 1280 : index
    %180 = vector.load %arg6[%c0_51, %c1280] : memref<1x3840xf32, #tpu.memory_space<vmem>>, vector<1x64xf32>
    tpu.vector_store %arg6[%c0_51, %c1280], %179 {strides = array<i32>} : memref<1x3840xf32, #tpu.memory_space<vmem>>, vector<1x64xf32>,
    %181 = vector.extract_strided_slice %156 {offsets = [11, 0], sizes = [1, 64], strides = [1, 1]} : vector<30x64xf32> to vector<1x64xf32>
    %c0_52 = arith.constant 0 : index
    %c1408 = arith.constant 1408 : index
    %182 = vector.load %arg6[%c0_52, %c1408] : memref<1x3840xf32, #tpu.memory_space<vmem>>, vector<1x64xf32>
    tpu.vector_store %arg6[%c0_52, %c1408], %181 {strides = array<i32>} : memref<1x3840xf32, #tpu.memory_space<vmem>>, vector<1x64xf32>,
    %183 = vector.extract_strided_slice %156 {offsets = [12, 0], sizes = [1, 64], strides = [1, 1]} : vector<30x64xf32> to vector<1x64xf32>
    %c0_53 = arith.constant 0 : index
    %c1536 = arith.constant 1536 : index
    %184 = vector.load %arg6[%c0_53, %c1536] : memref<1x3840xf32, #tpu.memory_space<vmem>>, vector<1x64xf32>
    tpu.vector_store %arg6[%c0_53, %c1536], %183 {strides = array<i32>} : memref<1x3840xf32, #tpu.memory_space<vmem>>, vector<1x64xf32>,
    %185 = vector.extract_strided_slice %156 {offsets = [13, 0], sizes = [1, 64], strides = [1, 1]} : vector<30x64xf32> to vector<1x64xf32>
    %c0_54 = arith.constant 0 : index
    %c1664 = arith.constant 1664 : index
    %186 = vector.load %arg6[%c0_54, %c1664] : memref<1x3840xf32, #tpu.memory_space<vmem>>, vector<1x64xf32>
    tpu.vector_store %arg6[%c0_54, %c1664], %185 {strides = array<i32>} : memref<1x3840xf32, #tpu.memory_space<vmem>>, vector<1x64xf32>,
    %187 = vector.extract_strided_slice %156 {offsets = [14, 0], sizes = [1, 64], strides = [1, 1]} : vector<30x64xf32> to vector<1x64xf32>
    %c0_55 = arith.constant 0 : index
    %c1792 = arith.constant 1792 : index
    %188 = vector.load %arg6[%c0_55, %c1792] : memref<1x3840xf32, #tpu.memory_space<vmem>>, vector<1x64xf32>
    tpu.vector_store %arg6[%c0_55, %c1792], %187 {strides = array<i32>} : memref<1x3840xf32, #tpu.memory_space<vmem>>, vector<1x64xf32>,
    %189 = vector.extract_strided_slice %156 {offsets = [15, 0], sizes = [1, 64], strides = [1, 1]} : vector<30x64xf32> to vector<1x64xf32>
    %c0_56 = arith.constant 0 : index
    %c1920 = arith.constant 1920 : index
    %190 = vector.load %arg6[%c0_56, %c1920] : memref<1x3840xf32, #tpu.memory_space<vmem>>, vector<1x64xf32>
    tpu.vector_store %arg6[%c0_56, %c1920], %189 {strides = array<i32>} : memref<1x3840xf32, #tpu.memory_space<vmem>>, vector<1x64xf32>,
    %191 = vector.extract_strided_slice %156 {offsets = [16, 0], sizes = [1, 64], strides = [1, 1]} : vector<30x64xf32> to vector<1x64xf32>
    %c0_57 = arith.constant 0 : index
    %c2048 = arith.constant 2048 : index
    %192 = vector.load %arg6[%c0_57, %c2048] : memref<1x3840xf32, #tpu.memory_space<vmem>>, vector<1x64xf32>
    tpu.vector_store %arg6[%c0_57, %c2048], %191 {strides = array<i32>} : memref<1x3840xf32, #tpu.memory_space<vmem>>, vector<1x64xf32>,
    %193 = vector.extract_strided_slice %156 {offsets = [17, 0], sizes = [1, 64], strides = [1, 1]} : vector<30x64xf32> to vector<1x64xf32>
    %c0_58 = arith.constant 0 : index
    %c2176 = arith.constant 2176 : index
    %194 = vector.load %arg6[%c0_58, %c2176] : memref<1x3840xf32, #tpu.memory_space<vmem>>, vector<1x64xf32>
    tpu.vector_store %arg6[%c0_58, %c2176], %193 {strides = array<i32>} : memref<1x3840xf32, #tpu.memory_space<vmem>>, vector<1x64xf32>,
    %195 = vector.extract_strided_slice %156 {offsets = [18, 0], sizes = [1, 64], strides = [1, 1]} : vector<30x64xf32> to vector<1x64xf32>
    %c0_59 = arith.constant 0 : index
    %c2304 = arith.constant 2304 : index
    %196 = vector.load %arg6[%c0_59, %c2304] : memref<1x3840xf32, #tpu.memory_space<vmem>>, vector<1x64xf32>
    tpu.vector_store %arg6[%c0_59, %c2304], %195 {strides = array<i32>} : memref<1x3840xf32, #tpu.memory_space<vmem>>, vector<1x64xf32>,
    %197 = vector.extract_strided_slice %156 {offsets = [19, 0], sizes = [1, 64], strides = [1, 1]} : vector<30x64xf32> to vector<1x64xf32>
    %c0_60 = arith.constant 0 : index
    %c2432 = arith.constant 2432 : index
    %198 = vector.load %arg6[%c0_60, %c2432] : memref<1x3840xf32, #tpu.memory_space<vmem>>, vector<1x64xf32>
    tpu.vector_store %arg6[%c0_60, %c2432], %197 {strides = array<i32>} : memref<1x3840xf32, #tpu.memory_space<vmem>>, vector<1x64xf32>,
    %199 = vector.extract_strided_slice %156 {offsets = [20, 0], sizes = [1, 64], strides = [1, 1]} : vector<30x64xf32> to vector<1x64xf32>
    %c0_61 = arith.constant 0 : index
    %c2560 = arith.constant 2560 : index
    %200 = vector.load %arg6[%c0_61, %c2560] : memref<1x3840xf32, #tpu.memory_space<vmem>>, vector<1x64xf32>
    tpu.vector_store %arg6[%c0_61, %c2560], %199 {strides = array<i32>} : memref<1x3840xf32, #tpu.memory_space<vmem>>, vector<1x64xf32>,
    %201 = vector.extract_strided_slice %156 {offsets = [21, 0], sizes = [1, 64], strides = [1, 1]} : vector<30x64xf32> to vector<1x64xf32>
    %c0_62 = arith.constant 0 : index
    %c2688 = arith.constant 2688 : index
    %202 = vector.load %arg6[%c0_62, %c2688] : memref<1x3840xf32, #tpu.memory_space<vmem>>, vector<1x64xf32>
    tpu.vector_store %arg6[%c0_62, %c2688], %201 {strides = array<i32>} : memref<1x3840xf32, #tpu.memory_space<vmem>>, vector<1x64xf32>,
    %203 = vector.extract_strided_slice %156 {offsets = [22, 0], sizes = [1, 64], strides = [1, 1]} : vector<30x64xf32> to vector<1x64xf32>
    %c0_63 = arith.constant 0 : index
    %c2816 = arith.constant 2816 : index
    %204 = vector.load %arg6[%c0_63, %c2816] : memref<1x3840xf32, #tpu.memory_space<vmem>>, vector<1x64xf32>
    tpu.vector_store %arg6[%c0_63, %c2816], %203 {strides = array<i32>} : memref<1x3840xf32, #tpu.memory_space<vmem>>, vector<1x64xf32>,
    %205 = vector.extract_strided_slice %156 {offsets = [23, 0], sizes = [1, 64], strides = [1, 1]} : vector<30x64xf32> to vector<1x64xf32>
    %c0_64 = arith.constant 0 : index
    %c2944 = arith.constant 2944 : index
    %206 = vector.load %arg6[%c0_64, %c2944] : memref<1x3840xf32, #tpu.memory_space<vmem>>, vector<1x64xf32>
    tpu.vector_store %arg6[%c0_64, %c2944], %205 {strides = array<i32>} : memref<1x3840xf32, #tpu.memory_space<vmem>>, vector<1x64xf32>,
    %207 = vector.extract_strided_slice %156 {offsets = [24, 0], sizes = [1, 64], strides = [1, 1]} : vector<30x64xf32> to vector<1x64xf32>
    %c0_65 = arith.constant 0 : index
    %c3072 = arith.constant 3072 : index
    %208 = vector.load %arg6[%c0_65, %c3072] : memref<1x3840xf32, #tpu.memory_space<vmem>>, vector<1x64xf32>
    tpu.vector_store %arg6[%c0_65, %c3072], %207 {strides = array<i32>} : memref<1x3840xf32, #tpu.memory_space<vmem>>, vector<1x64xf32>,
    %209 = vector.extract_strided_slice %156 {offsets = [25, 0], sizes = [1, 64], strides = [1, 1]} : vector<30x64xf32> to vector<1x64xf32>
    %c0_66 = arith.constant 0 : index
    %c3200 = arith.constant 3200 : index
    %210 = vector.load %arg6[%c0_66, %c3200] : memref<1x3840xf32, #tpu.memory_space<vmem>>, vector<1x64xf32>
    tpu.vector_store %arg6[%c0_66, %c3200], %209 {strides = array<i32>} : memref<1x3840xf32, #tpu.memory_space<vmem>>, vector<1x64xf32>,
    %211 = vector.extract_strided_slice %156 {offsets = [26, 0], sizes = [1, 64], strides = [1, 1]} : vector<30x64xf32> to vector<1x64xf32>
    %c0_67 = arith.constant 0 : index
    %c3328 = arith.constant 3328 : index
    %212 = vector.load %arg6[%c0_67, %c3328] : memref<1x3840xf32, #tpu.memory_space<vmem>>, vector<1x64xf32>
    tpu.vector_store %arg6[%c0_67, %c3328], %211 {strides = array<i32>} : memref<1x3840xf32, #tpu.memory_space<vmem>>, vector<1x64xf32>,
    %213 = vector.extract_strided_slice %156 {offsets = [27, 0], sizes = [1, 64], strides = [1, 1]} : vector<30x64xf32> to vector<1x64xf32>
    %c0_68 = arith.constant 0 : index
    %c3456 = arith.constant 3456 : index
    %214 = vector.load %arg6[%c0_68, %c3456] : memref<1x3840xf32, #tpu.memory_space<vmem>>, vector<1x64xf32>
    tpu.vector_store %arg6[%c0_68, %c3456], %213 {strides = array<i32>} : memref<1x3840xf32, #tpu.memory_space<vmem>>, vector<1x64xf32>,
    %215 = vector.extract_strided_slice %156 {offsets = [28, 0], sizes = [1, 64], strides = [1, 1]} : vector<30x64xf32> to vector<1x64xf32>
    %c0_69 = arith.constant 0 : index
    %c3584 = arith.constant 3584 : index
    %216 = vector.load %arg6[%c0_69, %c3584] : memref<1x3840xf32, #tpu.memory_space<vmem>>, vector<1x64xf32>
    tpu.vector_store %arg6[%c0_69, %c3584], %215 {strides = array<i32>} : memref<1x3840xf32, #tpu.memory_space<vmem>>, vector<1x64xf32>,
    %217 = vector.extract_strided_slice %156 {offsets = [29, 0], sizes = [1, 64], strides = [1, 1]} : vector<30x64xf32> to vector<1x64xf32>
    %c0_70 = arith.constant 0 : index
    %c3712 = arith.constant 3712 : index
    %218 = vector.load %arg6[%c0_70, %c3712] : memref<1x3840xf32, #tpu.memory_space<vmem>>, vector<1x64xf32>
    tpu.vector_store %arg6[%c0_70, %c3712], %217 {strides = array<i32>} : memref<1x3840xf32, #tpu.memory_space<vmem>>, vector<1x64xf32>,
    %c0_71 = arith.constant 0 : index
    %c0_72 = arith.constant 0 : index
    %219 = vector.load %arg6[%c0_71, %c0_72] : memref<1x3840xf32, #tpu.memory_space<vmem>>, vector<1x3840xf32>
    %c0_73 = arith.constant 0 : index
    %c0_74 = arith.constant 0 : index
    %220 = vector.load %arg3[%c0_73, %c0_74] : memref<20x3840xf32, #tpu.memory_space<vmem>>, vector<20x3840xf32>
    %cst_75 = arith.constant dense<0.000000e+00> : vector<1x20xf32>
    %221 = tpu.matmul %219, %220, %cst_75 {dimension_numbers = #tpu.dot_dimension_numbers<[1], [1], [0], [0], [0, 0, 1, 0], [], []>} : vector<1x3840xf32>, vector<20x3840xf32>, vector<1x20xf32> -> vector<1x20xf32>
    %c0_76 = arith.constant 0 : index
    %c0_77 = arith.constant 0 : index
    %222 = vector.load %arg4[%c0_76, %c0_77] : memref<1x20xf32, #tpu.memory_space<vmem>>, vector<1x20xf32>
    %223 = arith.addf %221, %222 : vector<1x20xf32>
    %cst_78 = arith.constant 0.000000e+00 : f32
    %224 = vector.broadcast %cst_78 : f32 to vector<1x20xf32>
    %225 = arith.subf %224, %223 : vector<1x20xf32>
    %226 = math.exp %225 : vector<1x20xf32>
    %cst_79 = arith.constant 1.000000e+00 : f32
    %227 = vector.broadcast %cst_79 : f32 to vector<1x20xf32>
    %228 = arith.addf %227, %226 : vector<1x20xf32>
    %cst_80 = arith.constant 1.000000e+00 : f32
    %229 = vector.broadcast %cst_80 : f32 to vector<1x20xf32>
    %230 = arith.divf %229, %228 : vector<1x20xf32>
    %c0_81 = arith.constant 0 : index
    %c0_82 = arith.constant 0 : index
    %231 = vector.load %arg5[%c0_81, %c0_82] : memref<1x20xf32, #tpu.memory_space<vmem>>, vector<1x20xf32>
    tpu.vector_store %arg5[%c0_81, %c0_82], %230 {strides = array<i32>} : memref<1x20xf32, #tpu.memory_space<vmem>>, vector<1x20xf32>,
    return
  }
  func.func @transform_0(%arg0: i32) -> (i32, i32, i32, i32) {
    %c0_i32 = arith.constant 0 : i32
    %c0_i32_0 = arith.constant 0 : i32
    %c0_i32_1 = arith.constant 0 : i32
    %c0_i32_2 = arith.constant 0 : i32
    %c0_i32_3 = arith.constant 0 : i32
    return %c0_i32, %c0_i32_0, %c0_i32_1, %c0_i32_2 : i32, i32, i32, i32
  }
  func.func @transform_1(%arg0: i32) -> i32 {
    %c0_i32 = arith.constant 0 : i32
    %c0_i32_0 = arith.constant 0 : i32
    return %c0_i32 : i32
  }
  func.func @transform_2(%arg0: i32) -> (i32, i32) {
    %c0_i32 = arith.constant 0 : i32
    %c0_i32_0 = arith.constant 0 : i32
    %c0_i32_1 = arith.constant 0 : i32
    return %c0_i32, %c0_i32_0 : i32, i32
  }
  func.func @transform_3(%arg0: i32) -> (i32, i32) {
    %c0_i32 = arith.constant 0 : i32
    %c0_i32_0 = arith.constant 0 : i32
    %c0_i32_1 = arith.constant 0 : i32
    return %c0_i32, %c0_i32_0 : i32, i32
  }
  func.func @transform_4(%arg0: i32) -> (i32, i32) {
    %c0_i32 = arith.constant 0 : i32
    %c0_i32_0 = arith.constant 0 : i32
    %c0_i32_1 = arith.constant 0 : i32
    return %c0_i32, %c0_i32_0 : i32, i32
  }
}

</mosaic_0001>

<bundles_post_ra>
// kernel: tpu_custom_call.1
= control target key start
LH: loop header
LB: loop body
LE: loop exit
PB: predicated region body
PF: predicated region fallthrough
CT: control target
= control target key end

     0   :  { %9 = vsyncpa [#allocation4], 0  ;;  %s2815_s0 = inlined_call_operand.hbm [shape: f32[3,3,32,64], index: 0, kind: input, shape index: {}]   ;;  %s2816_s1 = inlined_call_operand.vmem [shape: f32[27], index: 1, kind: input, shape index: {}]   ;;  %s2817_s2 = inlined_call_operand.hbm [shape: f32[20,3840], index: 2, kind: input, shape index: {}]   ;;  %s2818_s3 = inlined_call_operand.vmem [shape: f32[1,20], index: 3, kind: input, shape index: {}]   ;;  %s2819_s4 = inlined_call_operand.hbm [shape: f32[1,20], index: 4, kind: output, shape index: {}]  }
   0x1   :  { %10 = vsyncpa [#allocation6], 0 }
   0x2   :  { %11 = vsyncpa [#allocation9], 0 }
   0x3   :  { %12 = vsyncpa [#allocation5], 0  ;;  %s2121_s15 = smov [#allocation3]   ;;  %s31_s19 = sshll.u32 %s2816_s1, 4  ;;  %s32_s19 = int_to_ptr.vmem [resolvable:$true] %s31_s19 }
   0x4   :  { %s18_s16 = sshll.u32 %s2121_s15, 4  ;;  %s19_s16 = int_to_ptr.vmem [resolvable:$true] %s18_s16 }
   0x5   :  { %s2049_s20 = scalar_lea.vmem %s19_s16, 4608  ;;  %p2054_p1 = scmp.lt.s32.totalorder %s19_s16, %s19_s16 }
   0x6   :  { %p2050_p0 = scmp.ne.s32.totalorder %s19_s16, %s2049_s20  ;;  %p2055_p2 = scmp.lt.s32.totalorder %s2049_s20, %s2049_s20 }
   0x8   :  { %p2056_p3 = por %p2055_p2, %p2054_p1 }
   0xa   :  { %p2057_p4 = pnand %p2056_p3, %p2050_p0 }
   0xc   :  { %2060 = shalt.err (!%p2057_p4)
}
   0xd   :  { %s2122_s21 = smov 128   ;;  %s2123_s22 = smov 8  }
   0xe   :  { %24 = dma.hbm_to_vmem [thread:$0]  %s2815_s0, 4608, %s19_s16, [#allocation4], %s2122_s21, %s2122_s21, %s2123_s22  }
   0xf   :  { %s2061_s25 = scalar_lea.vmem %s32_s19, 16  ;;  %p2066_p6 = scmp.lt.s32.totalorder %s32_s19, %s32_s19 }
  0x10   :  { %p2062_p5 = scmp.ne.s32.totalorder %s32_s19, %s2061_s25  ;;  %p2067_p7 = scmp.lt.s32.totalorder %s2061_s25, %s2061_s25 }
  0x12   :  { %p2068_p8 = por %p2067_p7, %p2066_p6 }
  0x14   :  { %p2069_p9 = pnand %p2068_p8, %p2062_p5 }
  0x16   :  { %2072 = shalt.err (!%p2069_p9)
}
  0x17   :  { %s2124_s1 = smov [#allocation7]   ;;  %s2125_s26 = smov [#allocation8]  }
  0x18   :  { %34 = dma.vmem_to_smem %s32_s19, 16, %s2124_s1, [#allocation6]  }
  0x19   :  { %s40_s27 = sshll.u32 %s2125_s26, 4  ;;  %s41_s27 = int_to_ptr.vmem [resolvable:$true] %s40_s27 }
  0x1a   :  { %s2081_s28 = scalar_lea.vmem %s41_s27, 11520  ;;  %p2086_p11 = scmp.lt.s32.totalorder %s41_s27, %s41_s27 }
  0x1b   :  { %p2082_p10 = scmp.ne.s32.totalorder %s41_s27, %s2081_s28  ;;  %p2087_p12 = scmp.lt.s32.totalorder %s2081_s28, %s2081_s28 }
  0x1d   :  { %p2088_p13 = por %p2087_p12, %p2086_p11 }
  0x1f   :  { %p2089_p0 = pnand %p2088_p13, %p2082_p10 }
  0x21   :  { %2092 = shalt.err (!%p2089_p0)
}
  0x22   :  { %s2126_s0 = smov 3840   ;;  %s2127_s29 = smov 240  }
  0x23   :  { %46 = dma.hbm_to_vmem [thread:$0]  %s2817_s2, 11520, %s41_s27, [#allocation9], %s2126_s0, %s2126_s0, %s2127_s29  }
  0x24   :  { %2113 = dma.done.wait [#allocation4], 4608  }
  0x25   :  { %2114 = vsyncadd [#allocation4], 4294962688 }
  0x26   :  { %2115 = dma.done.wait [#allocation6], 16  }
  0x27   :  { %2116 = vsyncadd [#allocation6], 4294967280 }
  0x28   :  { %2117 = dma.done.wait [#allocation9], 11520  }
  0x29   :  { %2118 = vsyncadd [#allocation9], 4294955776 }
  0x2a   :  { %58 = sfence }
  0x2b   :  { %v742_v0 = vld [vmem:[#allocation8 + $0x1e8] sm:$0xf]  ;;  %v741_v1 = vld [vmem:[#allocation8 + $0x1e0] sm:$0xf]  ;;  %v744_v2 = vld [vmem:[#allocation8 + $0x1f8] sm:$0xf]  ;;  %v2821_v8 = vlaneseq }
  0x2c   :  { %952 = vmatprep.subr.mxu0 %v742_v0  ;;  %1022 = vmatprep.subr.mxu1 %v744_v2  ;;  %v743_v3 = vld [vmem:[#allocation8 + $0x1f0] sm:$0xf]  ;;  %v712_v4 = vld [vmem:[#allocation8 + $0xf8] sm:$0xff]  ;;  %s59_s6 = sld [smem:[#allocation7]]  ;;  %v714_v5 = vld [vmem:[#allocation8 + $0x108] sm:$0xff]  ;;  %v2820_v11 = vmov 0.0  }
  0x2d   :  { %953 = vmatpush1.xpose.msra.mxu0 %v741_v1  ;;  %1023 = vmatpush1.xpose.msra.mxu1 %v743_v3  ;;  %s2165_s7 = sld [smem:[#allocation7 + $0x1]]  ;;  %v711_v6 = vld [vmem:[#allocation8 + $0xf0] sm:$0xff]  ;;  %v713_v7 = vld [vmem:[#allocation8 + $0x100] sm:$0xff]  ;;  %v682_v9 = vld [vmem:[#allocation8 + $0x8] sm:$0xff]  ;;  %413 = vst [vmem:[#allocation2] sm:$0xff] %v2820_v11  ;;  %v2181_v16 = vshrl.u32 %v2821_v8, 7 }
  0x2e   :  { %954 = vmatprep.subr.mxu0 %v712_v4  ;;  %1024 = vmatprep.subr.mxu1 %v714_v5  ;;  %s2002_s2 = sld [smem:[#allocation7 + $0x2]]  ;;  %v684_v10 = vld [vmem:[#allocation8 + $0x18] sm:$0xff]  ;;  %414 = vst [vmem:[#allocation2 + $0x8] sm:$0xff] %v2820_v11  ;;  %415 = vst [vmem:[#allocation2 + $0x10] sm:$0xff] %v2820_v11  ;;  %v681_v12 = vld [vmem:[#allocation8] sm:$0xff]  ;;  %vm365_vm0 = vcmask 1046528  }
  0x2f   :  { %s2167_s8 = sld [smem:[#allocation7 + $0x3]]  ;;  %v683_v13 = vld [vmem:[#allocation8 + $0x10] sm:$0xff]  ;;  %v86_v14 = vld [vmem:[#allocation3] sm:$0xff]  ;;  %2860 = vst [vmem:[#allocation16_spill] sm:$0xff] %v2181_v16  ;;  %v87_v17 = vld [vmem:[#allocation3 + $0x8] sm:$0xff]  ;;  %v2196_v25 = vsub.s32 1, %v2181_v16 }
  0x30   :  { %s2169_s9 = sld [smem:[#allocation7 + $0x4]]  ;;  %v170_v19 = vld [vmem:[#allocation3 + $0x60] sm:$0xff]  ;;  %v171_v20 = vld [vmem:[#allocation3 + $0x68] sm:$0xff]  ;;  %v2199_v26 = vsub.s32 0, %v2181_v16  ;;  %v2129_v34 = vmov 1966171168  }
  0x31   :  { %955 = vmatpush1.xpose.msra.mxu0 %v711_v6  ;;  %1025 = vmatpush1.xpose.msra.mxu1 %v713_v7  ;;  %s2174_s10 = sld [smem:[#allocation7 + $0x5]]  ;;  %v266_v22 = vld [vmem:[#allocation3 + $0xc0] sm:$0xff]  ;;  %v267_v23 = vld [vmem:[#allocation3 + $0xc8] sm:$0xff]  ;;  %2863 = vst [vmem:[#allocation19_spill] sm:$0xff] %v2196_v25  ;;  %v426_v35 = vunpack.c.l.s4 %v2129_v34  ;;  %v748_v36 = vld [vmem:[#allocation8 + $0x218] sm:$0xf] }
  0x32   :  { %956 = vmatprep.subr.mxu0 %v682_v9  ;;  %1026 = vmatprep.subr.mxu1 %v684_v10  ;;  %s2176_s11 = sld [smem:[#allocation7 + $0x6]]  ;;  %v2178_v15 = vstv %s59_s6  ;;  %2864 = vst [vmem:[#allocation20_spill] sm:$0xff] %v2199_v26  ;;  %v746_v30 = vld [vmem:[#allocation8 + $0x208] sm:$0xf]  ;;  %v2245_v45 = vsub.s32 3, %v2181_v16  ;;  %v2271_v53 = vsub.s32 2, %v2181_v16 }
  0x33   :  { %2859 = vst [vmem:[#allocation15_spill] sm:$0xff] %v2178_v15  ;;  %s2183_s12 = sld [smem:[#allocation7 + $0x7]]  ;;  %v2186_v18 = vmul.f32 %v2178_v15, %v86_v14  ;;  %v2189_v21 = vstv %s2165_s7  ;;  %v2202_v27 = vmul.f32 %v2178_v15, %v87_v17  ;;  %v427_v44 = vunpack.c.0.s8 %v426_v35  ;;  %v106_v54 = vld [vmem:[#allocation3 + $0x20] sm:$0xff]  ;;  %v107_v59 = vld [vmem:[#allocation3 + $0x28] sm:$0xff] }
  0x34   :  { %2861 = vst [vmem:[#allocation17_spill] sm:$0xff] %v2189_v21  ;;  %s2191_s13 = sld [smem:[#allocation7 + $0x8]]  ;;  %v2193_v24 = vstv %s2002_s2  ;;  %v2210_v29 = vmul.f32 %v2189_v21, %v170_v19  ;;  %v2213_v31 = vmul.f32 %v2189_v21, %v171_v20  ;;  %2867 = vst [vmem:[#allocation23_spill] sm:$0xff] %v2245_v45  ;;  %v202_v61 = vld [vmem:[#allocation3 + $0x80] sm:$0xff]  ;;  %v2297_v0 = vsub.s32 5, %v2181_v16  ;;  %v203_v1 = vld [vmem:[#allocation3 + $0x88] sm:$0xff] }
  0x35   :  { %2862 = vst [vmem:[#allocation18_spill] sm:$0xff] %v2193_v24  ;;  %957 = vmatpush1.xpose.msra.mxu0 %v681_v12  ;;  %1027 = vmatpush1.xpose.msra.mxu1 %v683_v13  ;;  %s2204_s14 = sld [smem:[#allocation7 + $0x9]]  ;;  %v2207_v28 = vstv %s2167_s8  ;;  %v2221_v33 = vmul.f32 %v2193_v24, %v266_v22  ;;  %v2224_v37 = vmul.f32 %v2193_v24, %v267_v23  ;;  %2868 = vst [vmem:[#allocation24_spill] sm:$0xff] %v2271_v53  ;;  %v298_v3 = vld [vmem:[#allocation3 + $0xe0] sm:$0xff]  ;;  %vm385_vm1 = vcmask 1045504  }
  0x36   :  { %2865 = vst [vmem:[#allocation21_spill] sm:$0xff] %v2207_v28  ;;  %s2215_s15 = sld [smem:[#allocation7 + $0xa]]  ;;  %v2218_v32 = vstv %s2169_s9  ;;  %1092 = vmatprep.subr.mxu0 %v746_v30  ;;  %v96_v38 = vmul.f32 %v2207_v28, %v86_v14  ;;  %v97_v39 = vmul.f32 %v2207_v28, %v87_v17  ;;  %1162 = vmatprep.subr.mxu1 %v748_v36  ;;  %2872 = vst [vmem:[#allocation28_spill] sm:$0xff] %v2297_v0  ;;  %v234_v45 = vld [vmem:[#allocation3 + $0xa0] sm:$0xff]  ;;  %vm1982_vm8 = vcmask 155648  }
  0x37   :  { %s2226_s16 = sld [smem:[#allocation7 + $0xb]]  ;;  %v2231_v40 = vmul.f32 %v2218_v32, %v170_v19  ;;  %v2234_v41 = vstv %s2174_s10  ;;  %v2242_v43 = vmul.f32 %v2218_v32, %v171_v20  ;;  %v2285_v58 = vsub.s32 %v427_v44, %v2181_v16 }
  0x38   :  { %s2236_s17 = sld [smem:[#allocation7 + $0xc]]  ;;  %v2239_v42 = vstv %s2176_s11  ;;  %v2256_v48 = vmul.f32 %v2234_v41, %v266_v22  ;;  %v2259_v49 = vmul.f32 %v2234_v41, %v267_v23  ;;  %v2308_v5 = vsub.s32 7, %v2181_v16 }
  0x39   :  { %2866 = vst [vmem:[#allocation22_spill] sm:$0xff] %v2239_v42  ;;  %s2247_s18 = sld [smem:[#allocation7 + $0xd]]  ;;  %v2250_v46 = vmul.f32 %v2239_v42, %v86_v14  ;;  %v2253_v47 = vstv %s2183_s12  ;;  %v102_v50 = vmul.f32 %v2239_v42, %v87_v17  ;;  %2870 = vst [vmem:[#allocation26_spill] sm:$0xff] %v2285_v58 }
  0x3a   :  { %s2261_s19 = sld [smem:[#allocation7 + $0xe]]  ;;  %v2265_v51 = vmul.f32 %v2253_v47, %v170_v19  ;;  %v2268_v52 = vstv %s2191_s13  ;;  %v2279_v56 = vmul.f32 %v2253_v47, %v171_v20  ;;  %2874 = vst [vmem:[#allocation30_spill] sm:$0xff] %v2308_v5  ;;  %v2330_v19 = vld [vmem:[#allocation3 + $0xe8] sm:$0xff]  ;;  %v138_v5 = vld [vmem:[#allocation3 + $0x40] sm:$0xff] }
  0x3b   :  { %s2273_s20 = sld [smem:[#allocation7 + $0xf]]  ;;  %v2276_v55 = vstv %s2204_s14  ;;  %v2282_v57 = vmul.f32 %v2268_v52, %v266_v22  ;;  %v2294_v63 = vmul.f32 %v2268_v52, %v267_v23  ;;  %2876 = vst [vmem:[#allocation32_spill] sm:$0xff] %v2330_v19 }
  0x3c   :  { %2869 = vst [vmem:[#allocation25_spill] sm:$0xff] %v2276_v55  ;;  %s2287_s21 = sld [smem:[#allocation7 + $0x10]]  ;;  %v111_v60 = vmul.f32 %v2276_v55, %v106_v54  ;;  %v2291_v62 = vstv %s2215_s15  ;;  %v112_v6 = vmul.f32 %v2276_v55, %v107_v59 }
  0x3d   :  { %2871 = vst [vmem:[#allocation27_spill] sm:$0xff] %v2291_v62  ;;  %s2299_s22 = sld [smem:[#allocation7 + $0x11]]  ;;  %v2302_v2 = vmul.f32 %v2291_v62, %v202_v61  ;;  %v2305_v4 = vstv %s2226_s16  ;;  %v2321_v12 = vmul.f32 %v2291_v62, %v203_v1 }
  0x3e   :  { %2873 = vst [vmem:[#allocation29_spill] sm:$0xff] %v2305_v4  ;;  %s2311_s23 = sld [smem:[#allocation7 + $0x12]]  ;;  %v115_v7 = vadd.f32 %v111_v60, %v2186_v18  ;;  %v2315_v9 = vstv %s2236_s17  ;;  %v2318_v10 = vmul.f32 %v2305_v4, %v298_v3  ;;  %v2332_v18 = vld [vmem:[#allocation3 + $0x10] sm:$0xff]  ;;  %v2335_v20 = vadd.f32 %v112_v6, %v2202_v27 }
  0x3f   :  { %2875 = vst [vmem:[#allocation31_spill] sm:$0xff] %v2315_v9  ;;  %s2323_s24 = sld [smem:[#allocation7 + $0x13]]  ;;  %v120_v13 = vmul.f32 %v2315_v9, %v106_v54  ;;  %v121_v14 = vmul.f32 %v2315_v9, %v107_v59  ;;  %v2328_v17 = vstv %s2247_s18  ;;  %2877 = vst [vmem:[#allocation33_spill] sm:$0xff] %v2332_v18  ;;  %v98_v34 = vmul.f32 %v2207_v28, %v2332_v18 }
  0x40   :  { %s2337_s25 = sld [smem:[#allocation7 + $0x14]]  ;;  %v2340_v22 = vmul.f32 %v2328_v17, %v202_v61  ;;  %v2343_v23 = vmul.f32 %v2328_v17, %v203_v1  ;;  %v2346_v30 = vstv %s2261_s19 }
  0x41   :  { %2878 = vst [vmem:[#allocation34_spill] sm:$0xff] %v2346_v30  ;;  %s2350_s1 = sld [smem:[#allocation7 + $0x15]]  ;;  %v124_v35 = vadd.f32 %v120_v13, %v96_v38  ;;  %v125_v36 = vadd.f32 %v121_v14, %v97_v39  ;;  %v2353_v27 = vstv %s2273_s20  ;;  %v2356_v44 = vmul.f32 %v2346_v30, %v298_v3  ;;  %v2369_v38 = vld [vmem:[#allocation3 + $0x30] sm:$0xff] }
  0x42   :  { %2879 = vst [vmem:[#allocation35_spill] sm:$0xff] %v2353_v27  ;;  %s2358_s26 = sld [smem:[#allocation7 + $0x16]]  ;;  %v129_v60 = vmul.f32 %v2353_v27, %v106_v54  ;;  %v130_v6 = vmul.f32 %v2353_v27, %v107_v59  ;;  %v2363_v11 = vstv %s2287_s21  ;;  %v2367_v8 = vmul.f32 %v2346_v30, %v2330_v19  ;;  %2880 = vst [vmem:[#allocation36_spill] sm:$0xff] %v2369_v38 }
  0x43   :  { %s2371_s27 = sld [smem:[#allocation7 + $0x17]]  ;;  %v2374_v39 = vmul.f32 %v2363_v11, %v202_v61  ;;  %v2377_v13 = vmul.f32 %v2363_v11, %v203_v1  ;;  %v2380_v54 = vstv %s2299_s22  ;;  %v103_v59 = vmul.f32 %v2239_v42, %v2332_v18  ;;  %v139_v1 = vld [vmem:[#allocation3 + $0x48] sm:$0xff] }
  0x44   :  { %2881 = vst [vmem:[#allocation37_spill] sm:$0xff] %v2380_v54  ;;  %s2384_s28 = sld [smem:[#allocation7 + $0x18]]  ;;  %v133_v14 = vadd.f32 %v129_v60, %v2250_v46  ;;  %v134_v16 = vadd.f32 %v130_v6, %v102_v50  ;;  %v2388_v0 = vstv %s2311_s23  ;;  %v2391_v61 = vmul.f32 %v2380_v54, %v298_v3  ;;  %v2407_v3 = vld [vmem:[#allocation3 + $0xa8] sm:$0xff]  ;;  %v330_v6 = vld [vmem:[#allocation3 + $0x100] sm:$0xff] }
  0x45   :  { %2882 = vst [vmem:[#allocation38_spill] sm:$0xff] %v2388_v0  ;;  %s2393_s0 = sld [smem:[#allocation7 + $0x19]]  ;;  %v143_v53 = vmul.f32 %v2388_v0, %v138_v5  ;;  %v2397_v26 = vstv %s2323_s24  ;;  %v2401_v46 = vmul.f32 %v2380_v54, %v2330_v19  ;;  %v122_v50 = vmul.f32 %v2315_v9, %v2369_v38 }
  0x46   :  { %s2405_s29 = sld [smem:[#allocation7 + $0x1a]]  ;;  %v239_v60 = vmul.f32 %v2397_v26, %v234_v45  ;;  %v2411_v25 = vstv %s2337_s25  ;;  %v131_v24 = vmul.f32 %v2353_v27, %v2369_v38  ;;  %v144_v62 = vmul.f32 %v2388_v0, %v139_v1 }
  0x47   :  { %2883 = vst [vmem:[#allocation39_spill] sm:$0xff] %v2411_v25  ;;  %v147_v21 = vadd.f32 %v143_v53, %v115_v7  ;;  %v2417_v58 = vstv %s2350_s1  ;;  %v335_v9 = vmul.f32 %v2411_v25, %v330_v6  ;;  %v126_v55 = vadd.f32 %v122_v50, %v98_v34  ;;  %v2435_v50 = vld [vmem:[#allocation3 + $0x108] sm:$0xff] }
  0x48   :  { %v152_v42 = vmul.f32 %v2417_v58, %v138_v5  ;;  %v153_v28 = vmul.f32 %v2417_v58, %v139_v1  ;;  %v2423_v15 = vstv %s2358_s26  ;;  %v135_v18 = vadd.f32 %v131_v24, %v103_v59 }
  0x49   :  { %v179_v54 = vadd.f32 %v2210_v29, %v147_v21  ;;  %v248_v27 = vmul.f32 %v2423_v15, %v234_v45  ;;  %v249_v53 = vmul.f32 %v2423_v15, %v2407_v3  ;;  %v2430_v7 = vstv %s2371_s27 }
  0x4a   :  { %v156_v0 = vadd.f32 %v152_v42, %v124_v35  ;;  %v157_v38 = vadd.f32 %v153_v28, %v125_v36  ;;  %v2433_v34 = vstv %s2384_s28  ;;  %v344_v25 = vmul.f32 %v2430_v7, %v330_v6 }
  0x4b   :  { %v161_v24 = vmul.f32 %v2433_v34, %v138_v5  ;;  %v162_v21 = vmul.f32 %v2433_v34, %v139_v1  ;;  %v211_v29 = vadd.f32 %v2302_v2, %v179_v54  ;;  %v2442_v59 = vstv %s2393_s0  ;;  %v2451_v1 = vld [vmem:[#allocation3 + $0x50] sm:$0xff] }
  0x4c   :  { %v188_v30 = vadd.f32 %v2231_v40, %v156_v0  ;;  %v189_v42 = vadd.f32 %v2242_v43, %v157_v38  ;;  %v257_v28 = vmul.f32 %v2442_v59, %v234_v45  ;;  %v258_v35 = vmul.f32 %v2442_v59, %v2407_v3 }
  0x4d   :  { %v165_v36 = vadd.f32 %v161_v24, %v133_v14  ;;  %v166_v4 = vadd.f32 %v162_v21, %v134_v16  ;;  %v243_v19 = vadd.f32 %v239_v60, %v211_v29  ;;  %v345_v5 = vmul.f32 %v2430_v7, %v2435_v50 }
  0x4e   :  { %v220_v2 = vadd.f32 %v2340_v22, %v188_v30  ;;  %v221_v54 = vadd.f32 %v2343_v23, %v189_v42  ;;  %v2456_v40 = vstv %s2405_s29  ;;  %v148_v43 = vadd.f32 %v144_v62, %v2335_v20 }
  0x4f   :  { %v197_v45 = vadd.f32 %v2265_v51, %v165_v36  ;;  %v198_v0 = vadd.f32 %v2279_v56, %v166_v4  ;;  %v275_v16 = vadd.f32 %v2221_v33, %v243_v19  ;;  %v353_v38 = vmul.f32 %v2456_v40, %v330_v6  ;;  %v2472_v56 = vld [vmem:[#allocation3 + $0x70] sm:$0xff] }
  0x50   :  { %v252_v14 = vadd.f32 %v248_v27, %v220_v2  ;;  %v253_v60 = vadd.f32 %v249_v53, %v221_v54  ;;  %v354_v22 = vmul.f32 %v2456_v40, %v2435_v50  ;;  %v154_v23 = vmul.f32 %v2417_v58, %v2451_v1  ;;  %v2477_v6 = vld [vmem:[#allocation3 + $0x90] sm:$0xff] }
  0x51   :  { %v229_v30 = vadd.f32 %v2374_v39, %v197_v45  ;;  %v230_v62 = vadd.f32 %v2377_v13, %v198_v0  ;;  %v307_v51 = vadd.f32 %v2318_v10, %v275_v16  ;;  %v163_v33 = vmul.f32 %v2433_v34, %v2451_v1 }
  0x52   :  { %v284_v4 = vadd.f32 %v2256_v48, %v252_v14  ;;  %v285_v19 = vadd.f32 %v2259_v49, %v253_v60  ;;  %v158_v20 = vadd.f32 %v154_v23, %v126_v55  ;;  %v180_v27 = vadd.f32 %v2213_v31, %v148_v43 }
  0x53   :  { %v261_v39 = vadd.f32 %v257_v28, %v229_v30  ;;  %v262_v53 = vadd.f32 %v258_v35, %v230_v62  ;;  %v339_v13 = vadd.f32 %v335_v9, %v307_v51  ;;  %v167_v24 = vadd.f32 %v163_v33, %v135_v18  ;;  %v2490_v18 = vld [vmem:[#allocation3 + $0xb0] sm:$0xff] }
  0x54   :  { %v316_v10 = vadd.f32 %v2356_v44, %v284_v4  ;;  %v317_v21 = vadd.f32 %v2367_v8, %v285_v19  ;;  %v186_v29 = vmul.f32 %v2218_v32, %v2472_v56  ;;  %v195_v48 = vmul.f32 %v2253_v47, %v2472_v56  ;;  %v2515_v30 = vld [vmem:[#allocation3 + $0xf0] sm:$0xff] }
  0x55   :  { %v293_v49 = vadd.f32 %v2282_v57, %v261_v39  ;;  %v294_v31 = vadd.f32 %v2294_v63, %v262_v53  ;;  %v212_v55 = vadd.f32 %v2321_v12, %v180_v27  ;;  %v218_v9 = vmul.f32 %v2328_v17, %v2477_v6  ;;  %v2500_v12 = vld [vmem:[#allocation3 + $0xd0] sm:$0xff]  ;;  %v2887_v27 = vld [vmem:[#allocation32_spill] sm:$0xff]  ;;  %v2888_v39 = vld [vmem:[#allocation29_spill] sm:$0xff] }
  0x56   :  { %v348_v44 = vadd.f32 %v344_v25, %v316_v10  ;;  %v2492_v42 = vadd.f32 %v345_v5, %v317_v21  ;;  %v190_v8 = vadd.f32 %v186_v29, %v158_v20  ;;  %v199_v28 = vadd.f32 %v195_v48, %v167_v24  ;;  %v2524_v24 = vld [vmem:[#allocation3 + $0x18] sm:$0xff]  ;;  %v2890_v29 = vld [vmem:[#allocation37_spill] sm:$0xff] }
  0x57   :  { %v325_v35 = vadd.f32 %v2391_v61, %v293_v49  ;;  %v326_v36 = vadd.f32 %v2401_v46, %v294_v31  ;;  %v227_v57 = vmul.f32 %v2363_v11, %v2477_v6  ;;  %v240_v63 = vmul.f32 %v2397_v26, %v2407_v3  ;;  %v2891_v48 = vld [vmem:[#allocation39_spill] sm:$0xff] }
  0x58   :  { %v366_v2 = vrot.slane %v348_v44, 1  ;;  %v367_v54 = vrot.slane %v2492_v42, 1  ;;  %v2884_v25 = vlaneseq  ;;  %v222_v43 = vadd.f32 %v218_v9, %v190_v8  ;;  %v2535_v42 = vld [vmem:[#allocation3 + $0x38] sm:$0xff] }
  0x59   :  { %v250_v61 = vmul.f32 %v2423_v15, %v2490_v18  ;;  %v357_v46 = vadd.f32 %v353_v38, %v325_v35  ;;  %v358_v45 = vadd.f32 %v354_v22, %v326_v36  ;;  %v231_v0 = vadd.f32 %v227_v57, %v199_v28  ;;  %v2518_v38 = vld [vmem:[#allocation3 + $0x110] sm:$0xff]  ;;  %v2892_v35 = vld [vmem:[#allocation33_spill] sm:$0xff] }
  0x5a   :  { %vm2504_vm2 = vcmp.lt.s32.totalorder %v2884_v25, 64  ;;  %v244_v16 = vadd.f32 %v240_v63, %v212_v55  ;;  %v368_v3 = vsel %vm365_vm0, %v366_v2, %v367_v54  ;;  %v259_v60 = vmul.f32 %v2442_v59, %v2490_v18  ;;  %v2893_v36 = vld [vmem:[#allocation15_spill] sm:$0xff]  ;;  %v2894_v63 = vld [vmem:[#allocation21_spill] sm:$0xff] }
  0x5b   :  { %v254_v14 = vadd.f32 %v250_v61, %v222_v43  ;;  %v282_v23 = vmul.f32 %v2234_v41, %v2500_v12  ;;  %v377_v62 = vadd.f32 %v368_v3, %v339_v13  ;;  %v386_v51 = vrot.slane %v357_v46, 2  ;;  %v2889_v13 = vld [vmem:[#allocation34_spill] sm:$0xff]  ;;  %v2897_v3 = vld [vmem:[#allocation25_spill] sm:$0xff] }
  0x5c   :  { %v387_v33 = vrot.slane %v358_v45, 2  ;;  %v276_v4 = vadd.f32 %v2224_v37, %v244_v16  ;;  %v263_v22 = vadd.f32 %v259_v60, %v231_v0  ;;  %v291_v20 = vmul.f32 %v2268_v52, %v2500_v12  ;;  %v2895_v45 = vld [vmem:[#allocation22_spill] sm:$0xff]  ;;  %v2896_v16 = vld [vmem:[#allocation36_spill] sm:$0xff]  ;;  %v2898_v60 = vld [vmem:[#allocation31_spill] sm:$0xff] }
  0x5d   :  { %v286_v19 = vadd.f32 %v282_v23, %v254_v14  ;;  %v304_v53 = vmul.f32 %v2888_v39, %v2887_v27  ;;  %v314_v21 = vmul.f32 %v2889_v13, %v2515_v30  ;;  %v323_v37 = vmul.f32 %v2890_v29, %v2515_v30 }
  0x5e   :  { %v388_v10 = vsel %vm385_vm1, %v386_v51, %v387_v33  ;;  %v336_v49 = vmul.f32 %v2891_v48, %v2435_v50  ;;  %v295_v55 = vadd.f32 %v291_v20, %v263_v22  ;;  %v346_v44 = vmul.f32 %v2430_v7, %v2518_v38  ;;  %v2899_v22 = vld [vmem:[#allocation35_spill] sm:$0xff]  ;;  %v2900_v20 = vld [vmem:[#allocation38_spill] sm:$0xff] }
  0x5f   :  { %v397_v31 = vadd.f32 %v388_v10, %v377_v62  ;;  %v308_v9 = vadd.f32 %v304_v53, %v276_v4  ;;  %v318_v8 = vadd.f32 %v314_v21, %v286_v19  ;;  %v355_v28 = vmul.f32 %v2456_v40, %v2518_v38  ;;  %v2551_v62 = vld [vmem:[#allocation3 + $0x58] sm:$0xff]  ;;  %v2901_v53 = vld [vmem:[#allocation26_spill] sm:$0xff] }
  0x60   :  { %v93_v57 = vmul.f32 %v2893_v36, %v2892_v35  ;;  %v99_v2 = vmul.f32 %v2894_v63, %v2524_v24  ;;  %v327_v43 = vadd.f32 %v323_v37, %v295_v55  ;;  %v104_v0 = vmul.f32 %v2895_v45, %v2524_v24  ;;  %v2571_v63 = vld [vmem:[#allocation3 + $0x78] sm:$0xff] }
  0x61   :  { %vm401_vm3 = vcmp.gt.f32.partialorder %v397_v31, 0.0  ;;  %v405_v50 = vmul.f32 0.01, %v397_v31  ;;  %v340_v61 = vadd.f32 %v336_v49, %v308_v9  ;;  %v2543_v46 = vadd.f32 %v346_v44, %v318_v8 }
  0x62   :  { %v113_v14 = vmul.f32 %v2897_v3, %v2896_v16  ;;  %v123_v23 = vmul.f32 %v2898_v60, %v2535_v42  ;;  %v2553_v4 = vadd.f32 %v355_v28, %v327_v43  ;;  %v132_v19 = vmul.f32 %v2899_v22, %v2535_v42 }
  0x63   :  { %v409_v51 = vsel %vm401_vm3, %v397_v31, %v405_v50  ;;  %v145_v27 = vmul.f32 %v2900_v20, %v2451_v1  ;;  %v369_v37 = vrot.slane %v2543_v46, 1  ;;  %v155_v44 = vmul.f32 %v2417_v58, %v2551_v62 }
  0x64   :  { %423 = vst.msk [vmem:[#allocation2] sm:$0x1] %vm2504_vm2, %v409_v51  ;;  %v431_v10 = vrot.slane %v409_v51, %v2901_v53  ;;  %v455_v21 = vcombine.high %v409_v51, %v409_v51  ;;  %v117_v49 = vadd.f32 %v113_v14, %v93_v57  ;;  %v389_v55 = vrot.slane %v2553_v4, 2  ;;  %v2584_v51 = vld [vmem:[#allocation3 + $0x98] sm:$0xff] }
  0x65   :  { %v127_v31 = vadd.f32 %v123_v23, %v99_v2  ;;  %v136_v9 = vadd.f32 %v132_v19, %v104_v0  ;;  %v370_v35 = vsel %vm365_vm0, %v367_v54, %v369_v37  ;;  %v164_v60 = vmul.f32 %v2433_v34, %v2551_v62  ;;  %v2902_v54 = vld [vmem:[#allocation17_spill] sm:$0xff] }
  0x66   :  { %v432_v8 = vcombine.high %v431_v10, %v431_v10  ;;  %v439_v28 = vrot.slane %v431_v10, %v2901_v53  ;;  %v462_v1 = vrot.slane %v455_v21, %v2901_v53  ;;  %v378_v50 = vadd.f32 %v370_v35, %v340_v61 }
  0x67   :  { %v390_v57 = vsel %vm385_vm1, %v387_v33, %v389_v55  ;;  %v149_v2 = vadd.f32 %v145_v27, %v117_v49  ;;  %v159_v43 = vadd.f32 %v155_v44, %v127_v31  ;;  %v177_v23 = vmul.f32 %v2902_v54, %v2472_v56  ;;  %v2903_v49 = vld [vmem:[#allocation27_spill] sm:$0xff] }
  0x68   :  { %v446_v58 = vrot.slane %v432_v8, %v2901_v53  ;;  %v449_v45 = vcombine.high %v439_v28, %v439_v28  ;;  %v469_v0 = vrot.slane %v462_v1, %v2901_v53  ;;  %v472_v16 = vcombine.high %v462_v1, %v462_v1  ;;  %v2605_v44 = vld [vmem:[#allocation3 + $0xb8] sm:$0xff] }
  0x69   :  { %v398_v14 = vadd.f32 %v390_v57, %v378_v50  ;;  %v187_v61 = vmul.f32 %v2218_v32, %v2571_v63  ;;  %v196_v56 = vmul.f32 %v2253_v47, %v2571_v63  ;;  %v168_v19 = vadd.f32 %v164_v60, %v136_v9  ;;  %v2616_v57 = vld [vmem:[#allocation3 + $0xd8] sm:$0xff] }
  0x6a   :  { %448 = vst.msk [vmem:[#allocation2 + $0x1] sm:$0x1] %vm2504_vm2, %v446_v58  ;;  %451 = vst.msk [vmem:[#allocation2 + $0x2] sm:$0x1] %vm2504_vm2, %v449_v45  ;;  %v452_v33 = vcombine.high %v446_v58, %v446_v58  ;;  %v479_v34 = vrot.slane %v472_v16, %v2901_v53  ;;  %v482_v22 = vcombine.high %v469_v0, %v469_v0  ;;  %vm418_vm5 = vcmp.lt.s32.totalorder %v2884_v25, 768 }
  0x6b   :  { %471 = vst.msk [vmem:[#allocation2 + $0x4] sm:$0x1] %vm2504_vm2, %v469_v0  ;;  %vm402_vm4 = vcmp.gt.f32.partialorder %v398_v14, 0.0  ;;  %v406_v32 = vmul.f32 0.01, %v398_v14  ;;  %v181_v27 = vadd.f32 %v177_v23, %v149_v2  ;;  %v191_v21 = vadd.f32 %v187_v61, %v159_v43  ;;  %v2904_v43 = vld [vmem:[#allocation18_spill] sm:$0xff] }
  0x6c   :  { %454 = vst.msk [vmem:[#allocation2 + $0x3] sm:$0x1] %vm2504_vm2, %v452_v33  ;;  %481 = vst.msk [vmem:[#allocation2 + $0x5] sm:$0x1] %vm2504_vm2, %v479_v34  ;;  %v485_v10 = vcombine.high %v479_v34, %v479_v34  ;;  %v209_v31 = vmul.f32 %v2903_v49, %v2477_v6  ;;  %v219_v47 = vmul.f32 %v2328_v17, %v2584_v51  ;;  %v2630_v33 = vld [vmem:[#allocation3 + $0xf8] sm:$0xff] }
  0x6d   :  { %484 = vst.msk [vmem:[#allocation2 + $0x6] sm:$0x1] %vm2504_vm2, %v482_v22  ;;  %v410_v9 = vsel %vm402_vm4, %v398_v14, %v406_v32  ;;  %v200_v8 = vadd.f32 %v196_v56, %v168_v19  ;;  %v228_v28 = vmul.f32 %v2363_v11, %v2584_v51  ;;  %v241_v1 = vmul.f32 %v2397_v26, %v2490_v18  ;;  %v2634_v56 = vld [vmem:[#allocation3 + $0x118] sm:$0xff] }
  0x6e   :  { %487 = vst.msk [vmem:[#allocation2 + $0x7] sm:$0x1] %vm2504_vm2, %v485_v10  ;;  %488 = vst.msk [vmem:[#allocation2 + $0x8] sm:$0x1] %vm2504_vm2, %v410_v9  ;;  %v496_v6 = vrot.slane %v410_v9, %v2901_v53  ;;  %v520_v35 = vcombine.high %v410_v9, %v410_v9  ;;  %v213_v17 = vadd.f32 %v209_v31, %v181_v27 }
  0x6f   :  { %v223_v50 = vadd.f32 %v219_v47, %v191_v21  ;;  %v232_v2 = vadd.f32 %v228_v28, %v200_v8  ;;  %v251_v11 = vmul.f32 %v2423_v15, %v2605_v44  ;;  %v260_v18 = vmul.f32 %v2442_v59, %v2605_v44  ;;  %v2905_v8 = vld [vmem:[#allocation19_spill] sm:$0xff] }
  0x70   :  { %v273_v58 = vmul.f32 %v2904_v43, %v2500_v12  ;;  %v497_v45 = vcombine.high %v496_v6, %v496_v6  ;;  %v504_v0 = vrot.slane %v496_v6, %v2901_v53  ;;  %v527_v16 = vrot.slane %v520_v35, %v2901_v53  ;;  %v2907_v35 = vld [vmem:[#allocation23_spill] sm:$0xff] }
  0x71   :  { %v245_v14 = vadd.f32 %v241_v1, %v213_v17  ;;  %v255_v60 = vadd.f32 %v251_v11, %v223_v50  ;;  %v264_v23 = vadd.f32 %v260_v18, %v232_v2  ;;  %v283_v61 = vmul.f32 %v2234_v41, %v2616_v57  ;;  %v2906_v1 = vld [vmem:[#allocation20_spill] sm:$0xff]  ;;  %v2910_v18 = vld [vmem:[#allocation30_spill] sm:$0xff] }
  0x72   :  { %v292_v15 = vmul.f32 %v2268_v52, %v2616_v57  ;;  %v511_v59 = vrot.slane %v497_v45, %v2901_v53  ;;  %v514_v34 = vcombine.high %v504_v0, %v504_v0  ;;  %v534_v12 = vrot.slane %v527_v16, %v2901_v53  ;;  %v2908_v50 = vld [vmem:[#allocation24_spill] sm:$0xff] }
  0x73   :  { %v537_v22 = vcombine.high %v527_v16, %v527_v16  ;;  %v277_v32 = vadd.f32 %v273_v58, %v245_v14  ;;  %v287_v19 = vadd.f32 %v283_v61, %v255_v60  ;;  %v305_v10 = vmul.f32 %v2888_v39, %v2515_v30  ;;  %v2909_v2 = vld [vmem:[#allocation28_spill] sm:$0xff]  ;;  %v718_v14 = vld [vmem:[#allocation8 + $0x128] sm:$0xff] }
  0x74   :  { %v296_v27 = vadd.f32 %v292_v15, %v264_v23  ;;  %513 = vst.msk [vmem:[#allocation2 + $0x9] sm:$0x1] %vm2504_vm2, %v511_v59  ;;  %516 = vst.msk [vmem:[#allocation2 + $0xa] sm:$0x1] %vm2504_vm2, %v514_v34  ;;  %v517_v41 = vcombine.high %v511_v59, %v511_v59  ;;  %v547_v21 = vcombine.high %v534_v12, %v534_v12  ;;  %v716_v16 = vld [vmem:[#allocation8 + $0x118] sm:$0xff]  ;;  %v2911_v34 = vmov 0.0  }
  0x75   :  { %536 = vst.msk [vmem:[#allocation2 + $0xc] sm:$0x1] %vm2504_vm2, %v534_v12  ;;  %v544_v52 = vrot.slane %v537_v22, %v2901_v53  ;;  %v315_v31 = vmul.f32 %v2889_v13, %v2630_v33  ;;  %v2647_v47 = vld [vmem:[#allocation2] sm:$0xff]  ;;  %v324_v30 = vmul.f32 %v2890_v29, %v2630_v33  ;;  %v347_v9 = vmul.f32 %v2430_v7, %v2634_v56  ;;  %v747_v29 = vld [vmem:[#allocation8 + $0x210] sm:$0xf] }
  0x76   :  { %v783_v28 = vrot.slane %v2647_v47, %v2905_v8  ;;  %v779_v6 = vrot.slane %v2647_v47, %v2906_v1  ;;  %v791_v17 = vrot.slane %v2647_v47, %v2907_v35  ;;  %v787_v13 = vrot.slane %v2647_v47, %v2908_v50  ;;  %519 = vst.msk [vmem:[#allocation2 + $0xb] sm:$0x1] %vm2504_vm2, %v517_v41  ;;  %v745_v7 = vld [vmem:[#allocation8 + $0x200] sm:$0xf] }
  0x77   :  { %546 = vst.msk [vmem:[#allocation2 + $0xd] sm:$0x1] %vm2504_vm2, %v544_v52  ;;  %549 = vst.msk [vmem:[#allocation2 + $0xe] sm:$0x1] %vm2504_vm2, %v547_v21  ;;  %v799_v11 = vrot.slane %v2647_v47, %v2909_v2  ;;  %v807_v58 = vrot.slane %v2647_v47, %v2910_v18  ;;  %v309_v45 = vadd.f32 %v305_v10, %v277_v32  ;;  %v717_v22 = vld [vmem:[#allocation8 + $0x120] sm:$0xff]  ;;  %v686_v32 = vld [vmem:[#allocation8 + $0x28] sm:$0xff] }
  0x78   :  { %v337_v0 = vmul.f32 %v2891_v48, %v2518_v38  ;;  %990 = vmatprep.mubr.f32.mxu0 %v783_v28  ;;  %1060 = vmatprep.mubr.f32.mxu1 %v791_v17  ;;  %v550_v60 = vcombine.high %v544_v52, %v544_v52  ;;  %v319_v23 = vadd.f32 %v315_v31, %v287_v19  ;;  %v688_v19 = vld [vmem:[#allocation8 + $0x38] sm:$0xff]  ;;  %v685_v31 = vld [vmem:[#allocation8 + $0x20] sm:$0xff] }
  0x79   :  { %v328_v61 = vadd.f32 %v324_v30, %v296_v27  ;;  %991 = vmatmul.mubr.f32.vlgmr.msra.gmra.mxu0 %v779_v6  ;;  %1061 = vmatmul.mubr.f32.vlgmr.msra.gmra.mxu1 %v787_v13  ;;  %v356_v15 = vmul.f32 %v2456_v40, %v2634_v56  ;;  %v94_v59 = vmul.f32 %v2893_v36, %v2524_v24  ;;  %v715_v40 = vld [vmem:[#allocation8 + $0x110] sm:$0xff]  ;;  %v752_v28 = vld [vmem:[#allocation8 + $0x238] sm:$0xf] }
  0x7a   :  { %420 = vst.msk [vmem:[#allocation2 + $0x18] sm:$0x3f] %vm418_vm5, %v2911_v34  ;;  %1093 = vmatpush1.xpose.msra.mxu0 %v745_v7  ;;  %1163 = vmatpush1.xpose.msra.mxu1 %v747_v29  ;;  %v2681_v38 = vadd.f32 %v347_v9, %v319_v23  ;;  %v114_v25 = vmul.f32 %v2897_v3, %v2535_v42  ;;  %v2912_v3 = vld [vmem:[#allocation16_spill] sm:$0xff]  ;;  %v750_v9 = vld [vmem:[#allocation8 + $0x228] sm:$0xf] }
  0x7b   :  { %552 = vst.msk [vmem:[#allocation2 + $0xf] sm:$0x1] %vm2504_vm2, %v550_v60  ;;  %v146_v12 = vmul.f32 %v2900_v20, %v2551_v62  ;;  %1094 = vmatprep.subr.mxu0 %v716_v16  ;;  %1164 = vmatprep.subr.mxu1 %v718_v14  ;;  %v341_v24 = vadd.f32 %v337_v0, %v309_v45  ;;  %v2693_v41 = vsub.s32 4, %v2912_v3  ;;  %v2696_v62 = vsub.s32 6, %v2912_v3  ;;  %v751_v29 = vld [vmem:[#allocation8 + $0x230] sm:$0xf] }
  0x7c   :  { %v2687_v36 = vadd.f32 %v356_v15, %v328_v61  ;;  %1130 = vmatprep.mubr.f32.mxu0 %v799_v11  ;;  %1200 = vmatprep.mubr.f32.mxu1 %v807_v58  ;;  %v371_v27 = vrot.slane %v2681_v38, 1  ;;  %v118_v10 = vadd.f32 %v114_v25, %v94_v59  ;;  %v178_v42 = vmul.f32 %v2902_v54, %v2571_v63  ;;  %v687_v63 = vld [vmem:[#allocation8 + $0x30] sm:$0xff]  ;;  %v722_v11 = vld [vmem:[#allocation8 + $0x148] sm:$0xff]  ;;  %v692_v61 = vld [vmem:[#allocation8 + $0x58] sm:$0xff] }
  0x7d   :  { %v210_v46 = vmul.f32 %v2903_v49, %v2584_v51  ;;  %v803_v17 = vrot.slane %v2647_v47, %v2696_v62  ;;  %v242_v4 = vmul.f32 %v2397_v26, %v2605_v44  ;;  %v274_v51 = vmul.f32 %v2904_v43, %v2616_v57  ;;  %v720_v49 = vld [vmem:[#allocation8 + $0x138] sm:$0xff]  ;;  %v719_v57 = vld [vmem:[#allocation8 + $0x130] sm:$0xff]  ;;  %v721_v43 = vld [vmem:[#allocation8 + $0x140] sm:$0xff] }
  0x7e   :  { %v391_v20 = vrot.slane %v2687_v36, 2  ;;  %1095 = vmatpush1.xpose.msra.mxu0 %v715_v40  ;;  %1165 = vmatpush1.xpose.msra.mxu1 %v717_v22  ;;  %v372_v52 = vsel %vm365_vm0, %v369_v37, %v371_v27  ;;  %v150_v21 = vadd.f32 %v146_v12, %v118_v10  ;;  %v795_v37 = vrot.slane %v2647_v47, %v2693_v41  ;;  %v690_v23 = vld [vmem:[#allocation8 + $0x48] sm:$0xff]  ;;  %v689_v12 = vld [vmem:[#allocation8 + $0x40] sm:$0xff]  ;;  %v691_v40 = vld [vmem:[#allocation8 + $0x50] sm:$0xff] }
  0x7f   :  { %1096 = vmatprep.subr.mxu0 %v686_v32  ;;  %1166 = vmatprep.subr.mxu1 %v688_v19  ;;  %v379_v54 = vadd.f32 %v372_v52, %v341_v24  ;;  %v306_v16 = vmul.f32 %v2888_v39, %v2630_v33  ;;  %v338_v59 = vmul.f32 %v2891_v48, %v2634_v56  ;;  %v754_v19 = vld [vmem:[#allocation8 + $0x248] sm:$0xf]  ;;  %v756_v10 = vld [vmem:[#allocation8 + $0x258] sm:$0xf] }
  0x80   :  { %v392_v30 = vsel %vm385_vm1, %v389_v55, %v391_v20  ;;  %v182_v6 = vadd.f32 %v178_v42, %v150_v21  ;;  %v749_v55 = vld [vmem:[#allocation8 + $0x220] sm:$0xf] }
  0x81   :  { %v399_v7 = vadd.f32 %v392_v30, %v379_v54  ;;  %v753_v54 = vld [vmem:[#allocation8 + $0x240] sm:$0xf]  ;;  %v755_v30 = vld [vmem:[#allocation8 + $0x250] sm:$0xf] }
  0x82   :  { %v2715_v13 = vld [vmem:[#allocation2 + $0x8] sm:$0xff]  ;;  %1097 = vmatpush1.xpose.msra.mxu0 %v685_v31  ;;  %1167 = vmatpush1.xpose.msra.mxu1 %v687_v63  ;;  %v214_v0 = vadd.f32 %v210_v46, %v182_v6 }
  0x83   :  { %1232 = vmatprep.subr.mxu0 %v750_v9  ;;  %1302 = vmatprep.subr.mxu1 %v752_v28  ;;  %vm403_vm6 = vcmp.gt.f32.partialorder %v399_v7, 0.0  ;;  %v815_v47 = vrot.slane %v2715_v13, %v2905_v8  ;;  %v823_v58 = vrot.slane %v2715_v13, %v2907_v35  ;;  %v407_v45 = vmul.f32 0.01, %v399_v7  ;;  %v724_v9 = vld [vmem:[#allocation8 + $0x158] sm:$0xff]  ;;  %v726_v28 = vld [vmem:[#allocation8 + $0x168] sm:$0xff] }
  0x84   :  { %v246_v44 = vadd.f32 %v242_v4, %v214_v0  ;;  %v811_v42 = vrot.slane %v2715_v13, %v2906_v1  ;;  %v819_v3 = vrot.slane %v2715_v13, %v2908_v50  ;;  %v831_v6 = vrot.slane %v2715_v13, %v2909_v2  ;;  %v694_v4 = vld [vmem:[#allocation8 + $0x68] sm:$0xff] }
  0x85   :  { %1131 = vmatmul.mubr.f32.vlgmr.msra.gmra.mxu0 %v795_v37  ;;  %1201 = vmatmul.mubr.f32.vlgmr.msra.gmra.mxu1 %v803_v17  ;;  %v411_v26 = vsel %vm403_vm6, %v399_v7, %v407_v45  ;;  %v839_v46 = vrot.slane %v2715_v13, %v2910_v18  ;;  %v723_v17 = vld [vmem:[#allocation8 + $0x150] sm:$0xff]  ;;  %v725_v7 = vld [vmem:[#allocation8 + $0x160] sm:$0xff]  ;;  %v827_v45 = vrot.slane %v2715_v13, %v2693_v41  ;;  %v758_v0 = vld [vmem:[#allocation8 + $0x268] sm:$0xf] }
  0x86   :  { %1233 = vmatpush1.xpose.msra.mxu0 %v749_v55  ;;  %1303 = vmatpush1.xpose.msra.mxu1 %v751_v29  ;;  %553 = vst.msk [vmem:[#allocation2 + $0x10] sm:$0x1] %vm2504_vm2, %v411_v26  ;;  %v561_v14 = vrot.slane %v411_v26, %v2901_v53  ;;  %v585_v60 = vcombine.high %v411_v26, %v411_v26  ;;  %v696_v55 = vld [vmem:[#allocation8 + $0x78] sm:$0xff] }
  0x87   :  { %1234 = vmatprep.subr.mxu0 %v720_v49  ;;  %1304 = vmatprep.subr.mxu1 %v722_v11  ;;  %v278_v15 = vadd.f32 %v274_v51, %v246_v44  ;;  %v693_v51 = vld [vmem:[#allocation8 + $0x60] sm:$0xff]  ;;  %v695_v49 = vld [vmem:[#allocation8 + $0x70] sm:$0xff]  ;;  %v835_v26 = vrot.slane %v2715_v13, %v2696_v62  ;;  %v760_v44 = vld [vmem:[#allocation8 + $0x278] sm:$0xf] }
  0x88   :  { %1270 = vmatprep.mubr.f32.mxu0 %v815_v47  ;;  %1340 = vmatprep.mubr.f32.mxu1 %v823_v58  ;;  %v562_v34 = vcombine.high %v561_v14, %v561_v14  ;;  %v569_v39 = vrot.slane %v561_v14, %v2901_v53  ;;  %v592_v33 = vrot.slane %v585_v60, %v2901_v53  ;;  %v728_v13 = vld [vmem:[#allocation8 + $0x178] sm:$0xff] }
  0x89   :  { %v310_v25 = vadd.f32 %v306_v16, %v278_v15  ;;  %v730_v15 = vld [vmem:[#allocation8 + $0x188] sm:$0xff] }
  0x8a   :  { %1235 = vmatpush1.xpose.msra.mxu0 %v719_v57  ;;  %1305 = vmatpush1.xpose.msra.mxu1 %v721_v43  ;;  %v576_v22 = vrot.slane %v562_v34, %v2901_v53  ;;  %v579_v24 = vcombine.high %v569_v39, %v569_v39  ;;  %v599_v32 = vrot.slane %v592_v33, %v2901_v53 }
  0x8b   :  { %1236 = vmatprep.subr.mxu0 %v690_v23  ;;  %1306 = vmatprep.subr.mxu1 %v692_v61  ;;  %v602_v48 = vcombine.high %v592_v33, %v592_v33  ;;  %v342_v56 = vadd.f32 %v338_v59, %v310_v25  ;;  %v757_v23 = vld [vmem:[#allocation8 + $0x260] sm:$0xf]  ;;  %v759_v61 = vld [vmem:[#allocation8 + $0x270] sm:$0xf] }
  0x8c   :  { %578 = vst.msk [vmem:[#allocation2 + $0x11] sm:$0x1] %vm2504_vm2, %v576_v22  ;;  %581 = vst.msk [vmem:[#allocation2 + $0x12] sm:$0x1] %vm2504_vm2, %v579_v24  ;;  %v582_v52 = vcombine.high %v576_v22, %v576_v22  ;;  %v612_v21 = vcombine.high %v599_v32, %v599_v32  ;;  %v727_v25 = vld [vmem:[#allocation8 + $0x170] sm:$0xff]  ;;  %v700_v22 = vld [vmem:[#allocation8 + $0x98] sm:$0xff] }
  0x8d   :  { %601 = vst.msk [vmem:[#allocation2 + $0x14] sm:$0x1] %vm2504_vm2, %v599_v32  ;;  %v609_v31 = vrot.slane %v602_v48, %v2901_v53  ;;  %v380_v63 = vadd.f32 %v371_v27, %v342_v56  ;;  %v699_v24 = vld [vmem:[#allocation8 + $0x90] sm:$0xff]  ;;  %v762_v32 = vld [vmem:[#allocation8 + $0x288] sm:$0xf] }
  0x8e   :  { %1237 = vmatpush1.xpose.msra.mxu0 %v689_v12  ;;  %1307 = vmatpush1.xpose.msra.mxu1 %v691_v40  ;;  %584 = vst.msk [vmem:[#allocation2 + $0x13] sm:$0x1] %vm2504_vm2, %v582_v52  ;;  %614 = vst.msk [vmem:[#allocation2 + $0x16] sm:$0x1] %vm2504_vm2, %v612_v21  ;;  %v729_v12 = vld [vmem:[#allocation8 + $0x180] sm:$0xff]  ;;  %v698_v40 = vld [vmem:[#allocation8 + $0x88] sm:$0xff] }
  0x8f   :  { %1372 = vmatprep.subr.mxu0 %v754_v19  ;;  %1442 = vmatprep.subr.mxu1 %v756_v10  ;;  %611 = vst.msk [vmem:[#allocation2 + $0x15] sm:$0x1] %vm2504_vm2, %v609_v31  ;;  %v615_v38 = vcombine.high %v609_v31, %v609_v31  ;;  %v400_v27 = vadd.f32 %v391_v20, %v380_v63  ;;  %v764_v19 = vld [vmem:[#allocation8 + $0x298] sm:$0xf]  ;;  %v761_v48 = vld [vmem:[#allocation8 + $0x280] sm:$0xf] }
  0x90   :  { %v763_v56 = vld [vmem:[#allocation8 + $0x290] sm:$0xf]  ;;  %v733_v63 = vld [vmem:[#allocation8 + $0x1a0] sm:$0xff] }
  0x91   :  { %1271 = vmatmul.mubr.f32.vlgmr.msra.gmra.mxu0 %v811_v42  ;;  %1341 = vmatmul.mubr.f32.vlgmr.msra.gmra.mxu1 %v819_v3  ;;  %617 = vst.msk [vmem:[#allocation2 + $0x17] sm:$0x1] %vm2504_vm2, %v615_v38  ;;  %vm404_vm7 = vcmp.gt.f32.partialorder %v400_v27, 0.0  ;;  %v408_v37 = vmul.f32 0.01, %v400_v27  ;;  %v732_v42 = vld [vmem:[#allocation8 + $0x198] sm:$0xff] }
  0x92   :  { %1373 = vmatpush1.xpose.msra.mxu0 %v753_v54  ;;  %1443 = vmatpush1.xpose.msra.mxu1 %v755_v30  ;;  %v734_v3 = vld [vmem:[#allocation8 + $0x1a8] sm:$0xff]  ;;  %v731_v31 = vld [vmem:[#allocation8 + $0x190] sm:$0xff]  ;;  %v704_v30 = vld [vmem:[#allocation8 + $0xb8] sm:$0xff] }
  0x93   :  { %1374 = vmatprep.subr.mxu0 %v724_v9  ;;  %1444 = vmatprep.subr.mxu1 %v726_v28  ;;  %v412_v29 = vsel %vm404_vm7, %v400_v27, %v408_v37  ;;  %v702_v54 = vld [vmem:[#allocation8 + $0xa8] sm:$0xff]  ;;  %v701_v9 = vld [vmem:[#allocation8 + $0xa0] sm:$0xff]  ;;  %v703_v28 = vld [vmem:[#allocation8 + $0xb0] sm:$0xff] }
  0x94   :  { %1410 = vmatprep.mubr.f32.mxu0 %v831_v6  ;;  %1480 = vmatprep.mubr.f32.mxu1 %v839_v46  ;;  %618 = vst.msk [vmem:[#allocation2 + $0x18] sm:$0x1] %vm2504_vm2, %v412_v29  ;;  %v626_v36 = vrot.slane %v412_v29, %v2901_v53  ;;  %v650_v20 = vcombine.high %v412_v29, %v412_v29  ;;  %v766_v6 = vld [vmem:[#allocation8 + $0x2a8] sm:$0xf]  ;;  %v765_v37 = vld [vmem:[#allocation8 + $0x2a0] sm:$0xf] }
  0x96   :  { %1375 = vmatpush1.xpose.msra.mxu0 %v723_v17  ;;  %1445 = vmatpush1.xpose.msra.mxu1 %v725_v7  ;;  %v627_v11 = vcombine.high %v626_v36, %v626_v36  ;;  %v634_v47 = vrot.slane %v626_v36, %v2901_v53  ;;  %v657_v58 = vrot.slane %v650_v20, %v2901_v53  ;;  %v767_v17 = vld [vmem:[#allocation8 + $0x2b0] sm:$0xf]  ;;  %v736_v7 = vld [vmem:[#allocation8 + $0x1b8] sm:$0xff]  ;;  %v706_v20 = vld [vmem:[#allocation8 + $0xc8] sm:$0xff] }
  0x97   :  { %1376 = vmatprep.subr.mxu0 %v694_v4  ;;  %1446 = vmatprep.subr.mxu1 %v696_v55  ;;  %v738_v4 = vld [vmem:[#allocation8 + $0x1c8] sm:$0xff]  ;;  %v735_v36 = vld [vmem:[#allocation8 + $0x1b0] sm:$0xff] }
  0x98   :  { %v2772_v16 = vld [vmem:[#allocation2 + $0x10] sm:$0xff]  ;;  %v641_v57 = vrot.slane %v627_v11, %v2901_v53  ;;  %v644_v43 = vcombine.high %v634_v47, %v634_v47  ;;  %v664_v14 = vrot.slane %v657_v58, %v2901_v53  ;;  %v667_v60 = vcombine.high %v657_v58, %v657_v58  ;;  %v770_v11 = vld [vmem:[#allocation8 + $0x2c8] sm:$0xf] }
  0x99   :  { %v847_v59 = vrot.slane %v2772_v16, %v2905_v8  ;;  %v855_v34 = vrot.slane %v2772_v16, %v2907_v35  ;;  %v843_v5 = vrot.slane %v2772_v16, %v2906_v1  ;;  %v851_v10 = vrot.slane %v2772_v16, %v2908_v50 }
  0x9a   :  { %1377 = vmatpush1.xpose.msra.mxu0 %v693_v51  ;;  %1447 = vmatpush1.xpose.msra.mxu1 %v695_v49  ;;  %643 = vst.msk [vmem:[#allocation2 + $0x19] sm:$0x1] %vm2504_vm2, %v641_v57  ;;  %646 = vst.msk [vmem:[#allocation2 + $0x1a] sm:$0x1] %vm2504_vm2, %v644_v43  ;;  %v647_v39 = vcombine.high %v641_v57, %v641_v57  ;;  %v674_v33 = vrot.slane %v667_v60, %v2901_v53  ;;  %v697_v53 = vld [vmem:[#allocation8 + $0x80] sm:$0xff]  ;;  %v708_v51 = vld [vmem:[#allocation8 + $0xd8] sm:$0xff] }
  0x9b   :  { %1512 = vmatprep.subr.mxu0 %v758_v0  ;;  %1582 = vmatprep.subr.mxu1 %v760_v44  ;;  %666 = vst.msk [vmem:[#allocation2 + $0x1c] sm:$0x1] %vm2504_vm2, %v664_v14  ;;  %v863_v52 = vrot.slane %v2772_v16, %v2909_v2  ;;  %v871_v21 = vrot.slane %v2772_v16, %v2910_v18  ;;  %v768_v18 = vld [vmem:[#allocation8 + $0x2b8] sm:$0xf]  ;;  %v705_v49 = vld [vmem:[#allocation8 + $0xc0] sm:$0xff]  ;;  %v710_v44 = vld [vmem:[#allocation8 + $0xe8] sm:$0xff] }
  0x9c   :  { %649 = vst.msk [vmem:[#allocation2 + $0x1b] sm:$0x1] %vm2504_vm2, %v647_v39  ;;  %676 = vst.msk [vmem:[#allocation2 + $0x1d] sm:$0x1] %vm2504_vm2, %v674_v33  ;;  %v859_v46 = vrot.slane %v2772_v16, %v2693_v41  ;;  %v867_v38 = vrot.slane %v2772_v16, %v2696_v62  ;;  %v737_v62 = vld [vmem:[#allocation8 + $0x1c0] sm:$0xff]  ;;  %v740_v0 = vld [vmem:[#allocation8 + $0x1d8] sm:$0xff] }
  0x9d   :  { %1411 = vmatmul.mubr.f32.vlgmr.msra.gmra.mxu0 %v827_v45  ;;  %1481 = vmatmul.mubr.f32.vlgmr.msra.gmra.mxu1 %v835_v26  ;;  %v769_v45 = vld [vmem:[#allocation8 + $0x2c0] sm:$0xf]  ;;  %v739_v26 = vld [vmem:[#allocation8 + $0x1d0] sm:$0xff] }
  0x9e   :  { %1513 = vmatpush1.xpose.msra.mxu0 %v757_v23  ;;  %1583 = vmatpush1.xpose.msra.mxu1 %v759_v61  ;;  %v709_v16 = vld [vmem:[#allocation8 + $0xe0] sm:$0xff] }
  0x9f   :  { %1514 = vmatprep.subr.mxu0 %v728_v13  ;;  %1584 = vmatprep.subr.mxu1 %v730_v15 }
  0xa0   :  { %1550 = vmatprep.mubr.f32.mxu0 %v847_v59  ;;  %1620 = vmatprep.mubr.f32.mxu1 %v855_v34 }
  0xa2   :  { %1515 = vmatpush1.xpose.msra.mxu0 %v727_v25  ;;  %1585 = vmatpush1.xpose.msra.mxu1 %v729_v12 }
  0xa3   :  { %1516 = vmatprep.subr.mxu0 %v698_v40  ;;  %1586 = vmatprep.subr.mxu1 %v700_v22  ;;  %v680_v27 = vld [vmem:[#allocation2 + $0x18] sm:$0x3f] }
  0xa4   :  { %v879_v55 = vrot.slane %v680_v27, %v2905_v8  ;;  %v887_v29 = vrot.slane %v680_v27, %v2907_v35  ;;  %v707_v8 = vld [vmem:[#allocation8 + $0xd0] sm:$0xff]  ;;  %v875_v35 = vrot.slane %v680_v27, %v2906_v1  ;;  %v883_v47 = vrot.slane %v680_v27, %v2908_v50 }
  0xa5   :  { %v895_v58 = vrot.slane %v680_v27, %v2909_v2  ;;  %v891_v1 = vrot.slane %v680_v27, %v2693_v41  ;;  %v771_v41 = vld [vmem:[%s2818_s3] sm:$0x1]  ;;  %s2130_s3 = smov [#allocation10]  }
  0xa6   :  { %1517 = vmatpush1.xpose.msra.mxu0 %v697_v53  ;;  %1587 = vmatpush1.xpose.msra.mxu1 %v699_v24  ;;  %s1990_s6 = sshll.u32 %s2130_s3, 4  ;;  %s1991_s6 = int_to_ptr.vmem [resolvable:$true] %s1990_s6 }
  0xa7   :  { %1652 = vmatprep.subr.mxu0 %v762_v32  ;;  %1722 = vmatprep.subr.mxu1 %v764_v19  ;;  %s2093_s7 = scalar_lea.vmem %s1991_s6, 16  ;;  %s2097_s2 = scalar_lea.vmem %s1991_s6, 32 }
  0xa8   :  { %p2094_p1 = scmp.ne.s32.totalorder %s1991_s6, %s2093_s7  ;;  %p2098_p2 = scmp.lt.s32.totalorder %s1991_s6, %s1991_s6 }
  0xa9   :  { %1551 = vmatmul.mubr.f32.vlgmr.msra.gmra.mxu0 %v843_v5  ;;  %1621 = vmatmul.mubr.f32.vlgmr.msra.gmra.mxu1 %v851_v10  ;;  %p2099_p3 = scmp.lt.s32.totalorder %s2097_s2, %s2093_s7 }
  0xaa   :  { %1653 = vmatpush1.xpose.msra.mxu0 %v761_v48  ;;  %1723 = vmatpush1.xpose.msra.mxu1 %v763_v56 }
  0xab   :  { %1654 = vmatprep.subr.mxu0 %v732_v42  ;;  %1724 = vmatprep.subr.mxu1 %v734_v3  ;;  %p2100_p4 = por %p2099_p3, %p2098_p2 }
  0xac   :  { %1690 = vmatprep.mubr.f32.mxu0 %v863_v52  ;;  %1760 = vmatprep.mubr.f32.mxu1 %v871_v21 }
  0xad   :  { %p2101_p5 = pnand %p2100_p4, %p2094_p1 }
  0xae   :  { %1655 = vmatpush1.xpose.msra.mxu0 %v731_v31  ;;  %1725 = vmatpush1.xpose.msra.mxu1 %v733_v63 }
  0xaf   :  { %1656 = vmatprep.subr.mxu0 %v702_v54  ;;  %1726 = vmatprep.subr.mxu1 %v704_v30 }
  0xb2   :  { %1657 = vmatpush1.xpose.msra.mxu0 %v701_v9  ;;  %1727 = vmatpush1.xpose.msra.mxu1 %v703_v28 }
  0xb3   :  { %1792 = vmatprep.subr.mxu0 %v766_v6  ;;  %1862 = vmatprep.subr.mxu1 %v768_v18 }
  0xb5   :  { %1691 = vmatmul.mubr.f32.vlgmr.msra.gmra.mxu0 %v859_v46  ;;  %1761 = vmatmul.mubr.f32.vlgmr.msra.gmra.mxu1 %v867_v38 }
  0xb6   :  { %1793 = vmatpush1.xpose.msra.mxu0 %v765_v37  ;;  %1863 = vmatpush1.xpose.msra.mxu1 %v767_v17 }
  0xb7   :  { %1794 = vmatprep.subr.mxu0 %v736_v7  ;;  %1864 = vmatprep.subr.mxu1 %v738_v4 }
  0xb8   :  { %1830 = vmatprep.mubr.f32.mxu0 %v879_v55  ;;  %1900 = vmatprep.mubr.f32.mxu1 %v887_v29 }
  0xba   :  { %1795 = vmatpush1.xpose.msra.mxu0 %v735_v36  ;;  %1865 = vmatpush1.xpose.msra.mxu1 %v737_v62 }
  0xbb   :  { %1796 = vmatprep.subr.mxu0 %v706_v20  ;;  %1866 = vmatprep.subr.mxu1 %v708_v51 }
  0xbe   :  { %1797 = vmatpush1.xpose.msra.mxu0 %v705_v49  ;;  %1867 = vmatpush1.xpose.msra.mxu1 %v707_v8 }
  0xbf   :  { %1932 = vmatprep.subr.mxu0 %v770_v11 }
  0xc1   :  { %1831 = vmatmul.mubr.f32.vlgmr.msra.gmra.mxu0 %v875_v35  ;;  %1901 = vmatmul.mubr.f32.vlgmr.msra.gmra.mxu1 %v883_v47 }
  0xc2   :  { %1933 = vmatpush1.xpose.msra.mxu0 %v769_v45  ;;  %1970 = vmatprep.mubr.f32.mxu0 %v895_v58 }
  0xc3   :  { %1934 = vmatprep.subr.mxu0 %v740_v0 }
  0xc6   :  { %1935 = vmatpush1.xpose.msra.mxu0 %v739_v26 }
  0xc7   :  { %1936 = vmatprep.subr.mxu0 %v710_v44 }
  0xca   :  { %1937 = vmatpush1.xpose.msra.mxu0 %v709_v16 }
  0xcd   :  { %1971 = vmatmul.mubr.f32.vlgmr.msra.gmra.mxu0 %v891_v1 }
 0x139   :  { %v992_v50 = vpop.f32.mrf.mxu0  ;;  %v1062_v57 = vpop.f32.mrf.mxu1 }
 0x13a   :  { %v993_v40 = vadd.f32 %v992_v50, %v771_v41 }
 0x13b   :  { %v994_v2 = vpop.f32.mrf.mxu0  ;;  %v1064_v43 = vpop.f32.mrf.mxu1 }
 0x13c   :  { %v1063_v22 = vadd.f32 %v1062_v57, %v993_v40 }
 0x145   :  { %v1132_v14 = vpop.f32.mrf.mxu0  ;;  %v1202_v60 = vpop.f32.mrf.mxu1 }
 0x146   :  { %v1133_v32 = vadd.f32 %v1132_v14, %v1063_v22 }
 0x147   :  { %v1134_v23 = vpop.f32.mrf.mxu0  ;;  %v1204_v61 = vpop.f32.mrf.mxu1 }
 0x148   :  { %v1203_v10 = vadd.f32 %v1202_v60, %v1133_v32 }
 0x151   :  { %v1272_v13 = vpop.f32.mrf.mxu0  ;;  %v1342_v15 = vpop.f32.mrf.mxu1 }
 0x152   :  { %v1273_v48 = vadd.f32 %v1272_v13, %v1203_v10 }
 0x153   :  { %v1274_v59 = vpop.f32.mrf.mxu0  ;;  %v1344_v34 = vpop.f32.mrf.mxu1 }
 0x154   :  { %v1343_v56 = vadd.f32 %v1342_v15, %v1273_v48 }
 0x15d   :  { %v1412_v39 = vpop.f32.mrf.mxu0  ;;  %v1482_v33 = vpop.f32.mrf.mxu1 }
 0x15e   :  { %v1413_v52 = vadd.f32 %v1412_v39, %v1343_v56 }
 0x15f   :  { %v1414_v25 = vpop.f32.mrf.mxu0  ;;  %v1484_v12 = vpop.f32.mrf.mxu1 }
 0x160   :  { %v1483_v63 = vadd.f32 %v1482_v33, %v1413_v52 }
 0x169   :  { %v1552_v53 = vpop.f32.mrf.mxu0  ;;  %v1622_v24 = vpop.f32.mrf.mxu1 }
 0x16a   :  { %v1553_v54 = vadd.f32 %v1552_v53, %v1483_v63 }
 0x16b   :  { %v1554_v19 = vpop.f32.mrf.mxu0  ;;  %v1624_v5 = vpop.f32.mrf.mxu1 }
 0x16c   :  { %v1623_v30 = vadd.f32 %v1622_v24, %v1553_v54 }
 0x175   :  { %v1692_v42 = vpop.f32.mrf.mxu0  ;;  %v1762_v3 = vpop.f32.mrf.mxu1 }
 0x176   :  { %v1693_v6 = vadd.f32 %v1692_v42, %v1623_v30 }
 0x177   :  { %v1694_v21 = vpop.f32.mrf.mxu0  ;;  %v1764_v31 = vpop.f32.mrf.mxu1 }
 0x178   :  { %v1763_v38 = vadd.f32 %v1762_v3, %v1693_v6 }
 0x181   :  { %v1832_v9 = vpop.f32.mrf.mxu0  ;;  %v1902_v28 = vpop.f32.mrf.mxu1 }
 0x182   :  { %v1833_v27 = vadd.f32 %v1832_v9, %v1763_v38 }
 0x183   :  { %v1834_v18 = vpop.f32.mrf.mxu0  ;;  %v1904_v46 = vpop.f32.mrf.mxu1 }
 0x184   :  { %v1903_v37 = vadd.f32 %v1902_v28, %v1833_v27 }
 0x18d   :  { %v1972_v17 = vpop.f32.mrf.mxu0 }
 0x18e   :  { %v1973_v7 = vadd.f32 %v1972_v17, %v1903_v37 }
 0x18f   :  { %v1974_v4 = vpop.f32.mrf.mxu0 }
 0x190   :  { %v1976_v55 = vsub.f32 0.0, %v1973_v7 }
 0x192   :  { %v1977_v29 = vmul.f32 1.442695, %v1976_v55 }
 0x194   :  { %2037 = vpow2.f32 %v1977_v29 }
 0x1a1   :  { %v2038_v36 = vpop.eup %2037 }
 0x1a2   :  { %v1979_v62 = vadd.f32 1.0, %v2038_v36 }
 0x1a4   :  { %2039 = vrcp.f32 %v1979_v62 }
 0x1b1   :  { %v2040_v20 = vpop.eup %2039 }
 0x1b2   :  { %1983 = vst.msk [vmem:[#allocation10] sm:$0x1] %vm1982_vm8, %v2040_v20 }
 0x1b3   :  { %2104 = shalt.err (!%p2101_p5)
}
 0x1b4   :  { %1993 = dma.vmem_to_hbm [thread:$0]  %s1991_s6, 16, %s2819_s4, [#allocation5]  }
 0x1b5   :  { %2119 = dma.done.wait [#allocation5], 16  }
 0x1b6   :  { %2120 = vsyncadd [#allocation5], 4294967280 }
 0x1b7   :  { %1997 = vsyncpa [#allocation4], 1 }
 0x1b8   :  { %1998 = vsyncpa [#allocation9], 1 }
 0x1b9   :  { %1999 = vsyncpa [#allocation5], 1 }
 0x1ba   :  { %2000 = vsyncpa [#allocation6], 1 }

</bundles_post_ra>
